<compile_context>
chip_gen: v5e
topology: v5e:2x2
jax: 0.10.0
libtpu: 0.0.40
codegen_flags: <defaults>
</compile_context>

<pallas_src>
import jax
import jax.numpy as jnp
from jax.experimental import pallas as pl
from jax.experimental.pallas import tpu as pltpu


def ran_decoder_fused_kernel(ys_ref, cs_ref, h0_ref, m0_ref,
                             wyi_ref, wci_ref, whi_ref, bi_ref,
                             wyf_ref, wcf_ref, whf_ref, bf_ref,
                             wd4_ref, wd5_ref, bd_ref,
                             out_ref, hid_ref):
    """One launch = full T-step RAN decode.

    ys_ref/cs_ref: (T, d)   h0_ref/m0_ref: (1, d)
    gate weights : (d, d) each, gate biases (1, d) (pre-summed)
    wd4/wd5      : (d, V),  bd: (1, V) (pre-summed)
    out_ref      : (T, V) log-probs      hid_ref: (T, d) hidden (= m_t)
    """
    T = ys_ref.shape[0]
    f32 = jnp.float32

    ys = ys_ref[...]                       # (T, d)
    cs = cs_ref[...]                       # (T, d)

    # ---- Phase 1: batched non-recurrent gate pre-activations (MXU, T rows) --
    gi = (jnp.dot(ys, wyi_ref[...], preferred_element_type=f32)
          + jnp.dot(cs, wci_ref[...], preferred_element_type=f32)
          + bi_ref[...])                   # (T, d)
    gf = (jnp.dot(ys, wyf_ref[...], preferred_element_type=f32)
          + jnp.dot(cs, wcf_ref[...], preferred_element_type=f32)
          + bf_ref[...])                   # (T, d)

    # ---- Phase 2: serial recurrence — only the h-dependent term per step ----
    whi = whi_ref[...]                     # (d, d), resident in vregs/VMEM
    whf = whf_ref[...]
    h = h0_ref[...]                        # (1, d)
    m = m0_ref[...]                        # (1, d)
    m_rows = []
    for t in range(T):                     # static T -> fully unrolled
        i_g = jax.nn.sigmoid(gi[t:t + 1, :]
                             + jnp.dot(h, whi, preferred_element_type=f32))
        f_g = jax.nn.sigmoid(gf[t:t + 1, :]
                             + jnp.dot(h, whf, preferred_element_type=f32))
        m = m * f_g + i_g * cs[t:t + 1, :]
        h = m                              # hidden_{t+1} == m_t (single state)
        m_rows.append(m)

    M = jnp.concatenate(m_rows, axis=0)    # (T, d)
    hid_ref[...] = M                       # one bulk, sublane-dense store

    # ---- Phase 3: batched vocab projection + row-wise log-softmax over V ----
    logits = (jnp.dot(M, wd4_ref[...], preferred_element_type=f32)
              + jnp.dot(cs, wd5_ref[...], preferred_element_type=f32)
              + bd_ref[...])               # (T, V)
    mx = jnp.max(logits, axis=-1, keepdims=True)
    shifted = logits - mx
    lse = jnp.log(jnp.sum(jnp.exp(shifted), axis=-1, keepdims=True))
    out_ref[...] = shifted - lse           # one bulk, lane-dense store


def make_params(d, V, key):
    """nn.Linear-style init (U[-1/sqrt(fan_in), +1/sqrt(fan_in)]), float32.

    Returns (kernel_params, raw_params):
      kernel_params = (W_y_i, W_c_i, W_h_i, b_i,      # i-gate   (d,d)x3, (1,d)
                       W_y_f, W_c_f, W_h_f, b_f,      # f-gate   (d,d)x3, (1,d)
                       W_d4, W_d5, b_d)               # decoder  (d,V)x2, (1,V)
      raw_params    = per-layer f32 params, used only by the JAX reference.
    All weights stored transposed as (d_in, d_out) so x @ W == Linear(x).
    """
    keys = jax.random.split(key, 16)
    kd = 1.0 / jnp.sqrt(jnp.float32(d))

    wc = [jax.random.uniform(keys[k], (d, d), jnp.float32, -kd, kd)
          for k in range(6)]                                  # w1..w6
    bc = [jax.random.uniform(keys[6 + k], (1, d), jnp.float32, -kd, kd)
          for k in range(6)]

    wd4 = jax.random.uniform(keys[12], (d, V), jnp.float32, -kd, kd)
    bd4 = jax.random.uniform(keys[13], (1, V), jnp.float32, -kd, kd)
    wd5 = jax.random.uniform(keys[14], (d, V), jnp.float32, -kd, kd)
    bd5 = jax.random.uniform(keys[15], (1, V), jnp.float32, -kd, kd)

    kernel_params = (wc[0], wc[1], wc[2], bc[0] + bc[1] + bc[2],   # i gate
                     wc[3], wc[4], wc[5], bc[3] + bc[4] + bc[5],   # f gate
                     wd4, wd5, bd4 + bd5)                          # decoder
    raw = (jnp.stack(wc), jnp.stack(bc), wd4, bd4, wd5, bd5)
    return kernel_params, raw


def ran_decoder_forward_seq(ys, cs, h0, m0, params):
    """Run T fused decode steps in one pallas_call (single grid step).

    ys, cs : (T, 1, d) f32; h0, m0 : (1, d) f32.
    Returns (log_probs (T, 1, V) f32, hiddens (T, 1, d) f32).
    """
    (wyi, wci, whi, bi, wyf, wcf, whf, bf, wd4, wd5, bd) = params
    T, _, d = ys.shape
    V = wd4.shape[-1]

    ys2 = ys.reshape(T, d)
    cs2 = cs.reshape(T, d)

    # 4 batched gate dots + 2*T recurrent dots + 2 batched decoder dots.
    flops = 8 * T * d * d + 4 * T * d * d + 4 * T * d * V
    cost = pl.CostEstimate(
        flops=flops,
        transcendentals=T * (2 * d + V + 1),
        bytes_accessed=4 * (2 * T * d + 2 * d          # ys, cs, h0, m0
                            + 6 * d * d + 2 * d        # gate weights + biases
                            + 2 * d * V + V            # decoder weights + bias
                            + T * (V + d)),            # outputs
    )

    out, hid = pl.pallas_call(
        ran_decoder_fused_kernel,
        out_shape=(jax.ShapeDtypeStruct((T, V), jnp.float32),
                   jax.ShapeDtypeStruct((T, d), jnp.float32)),
        compiler_params=pltpu.CompilerParams(
            vmem_limit_bytes=32 * 1024 * 1024),
        cost_estimate=cost,
    )(ys2, cs2, h0, m0, wyi, wci, whi, bi, wyf, wcf, whf, bf, wd4, wd5, bd)
    # TODO(synk): at production d/V, pad d to a multiple of 128 and tile the
    # (d, V) decoder weight over V (online log-softmax) to fit v7x's 64 MiB VMEM.
    return out.reshape(T, 1, V), hid.reshape(T, 1, d)


def ran_decoder_forward(y, hidden, c, m_prev, params):
    """Single step matching RAN_Decoder.forward shapes.

    y, hidden, c: (1, 1, d); m_prev: (1, d) (the cell's former_m[-1]).
    Returns (output (1, V), new hidden (1, 1, d)).
    """
    d = y.shape[-1]
    out, hid = ran_decoder_forward_seq(
        y.reshape(1, 1, d), c.reshape(1, 1, d),
        hidden.reshape(1, d), m_prev.reshape(1, d), params)
    return out.reshape(1, -1), hid.reshape(1, 1, d)


def ran_decoder_reference(ys, cs, h0, m0, raw):
    """Pure-JAX f32 reference of the T-step decode loop."""
    wc, bc, wd4, bd4, wd5, bd5 = raw

    def step(carry, yc):
        h, m_prev = carry
        y, c = yc
        i = jax.nn.sigmoid(y @ wc[0] + bc[0] + c @ wc[1] + bc[1] + h @ wc[2] + bc[2])
        f = jax.nn.sigmoid(y @ wc[3] + bc[3] + c @ wc[4] + bc[4] + h @ wc[5] + bc[5])
        m = m_prev * f + i * c
        logits = m @ wd4 + bd4 + c @ wd5 + bd5
        lp = jax.nn.log_softmax(logits, axis=-1)
        return (m, m), (lp, m)

    _, (lps, ms) = jax.lax.scan(step, (h0, m0), (ys, cs))
    return lps, ms


if __name__ == "__main__":
    d, V, T = 32, 128, 8
    key = jax.random.PRNGKey(0)
    kp, ky, kc = jax.random.split(key, 3)

    params, raw = make_params(d, V, kp)

    ys = jax.random.normal(ky, (T, 1, d), jnp.float32)   # token embeddings per step
    cs = jax.random.normal(kc, (T, 1, d), jnp.float32)   # context vectors per step
    h0 = jnp.zeros((1, d), jnp.float32)                   # initHidden()
    m0 = jnp.zeros((1, d), jnp.float32)                   # RAN_Cell.former_m[0]

    # Fused multi-step call: one launch, one grid step, weights VMEM-resident.
    out, hid = ran_decoder_forward_seq(ys, cs, h0, m0, params)
    jax.block_until_ready((out, hid))

    assert out.shape == (T, 1, V)
    assert hid.shape == (T, 1, d)
    # log_softmax rows must sum to 1 in prob space.
    assert jnp.allclose(jnp.sum(jnp.exp(out), axis=-1), 1.0, atol=1e-3)

    # Check against the pure-JAX f32 reference (f32 weights now -> tight).
    ref_out, ref_hid = ran_decoder_reference(ys, cs, h0, m0, raw)
    assert jnp.allclose(out, ref_out, atol=5e-2), float(jnp.max(jnp.abs(out - ref_out)))
    assert jnp.allclose(hid, ref_hid, atol=2e-2), float(jnp.max(jnp.abs(hid - ref_hid)))

    # Single-step API (matches the PyTorch module's forward shapes).
    out1, hid1 = ran_decoder_forward(ys[0:1], jnp.zeros((1, 1, d), jnp.float32),
                                     cs[0:1], m0, params)
    jax.block_until_ready((out1, hid1))
    assert out1.shape == (1, V)
    assert hid1.shape == (1, 1, d)
    # Step 0 of the fused sequence also starts from zero h/m -> must agree.
    assert jnp.allclose(out1, out[0], atol=1e-4)

    print("KERNEL_OK")
</pallas_src>

<mosaic_0001>
module attributes {stable_mosaic.version = 11 : i64} {
  func.func @ran_decoder_fused_kernel(%arg0: memref<8x32xf32, #tpu.memory_space<vmem>>, %arg1: memref<8x32xf32, #tpu.memory_space<vmem>>, %arg2: memref<1x32xf32, #tpu.memory_space<vmem>>, %arg3: memref<1x32xf32, #tpu.memory_space<vmem>>, %arg4: memref<32x32xf32, #tpu.memory_space<vmem>>, %arg5: memref<32x32xf32, #tpu.memory_space<vmem>>, %arg6: memref<32x32xf32, #tpu.memory_space<vmem>>, %arg7: memref<1x32xf32, #tpu.memory_space<vmem>>, %arg8: memref<32x32xf32, #tpu.memory_space<vmem>>, %arg9: memref<32x32xf32, #tpu.memory_space<vmem>>, %arg10: memref<32x32xf32, #tpu.memory_space<vmem>>, %arg11: memref<1x32xf32, #tpu.memory_space<vmem>>, %arg12: memref<32x128xf32, #tpu.memory_space<vmem>>, %arg13: memref<32x128xf32, #tpu.memory_space<vmem>>, %arg14: memref<1x128xf32, #tpu.memory_space<vmem>>, %arg15: memref<8x128xf32, #tpu.memory_space<vmem>>, %arg16: memref<8x32xf32, #tpu.memory_space<vmem>>) attributes {dimension_semantics = [], scalar_prefetch = 0 : i64, scratch_operands = 0 : i64, tpu.core_type = #tpu.core_type<tc>} {
    %c0 = arith.constant 0 : index
    %c0_0 = arith.constant 0 : index
    %0 = vector.load %arg0[%c0, %c0_0] : memref<8x32xf32, #tpu.memory_space<vmem>>, vector<8x32xf32>
    %c0_1 = arith.constant 0 : index
    %c0_2 = arith.constant 0 : index
    %1 = vector.load %arg1[%c0_1, %c0_2] : memref<8x32xf32, #tpu.memory_space<vmem>>, vector<8x32xf32>
    %c0_3 = arith.constant 0 : index
    %c0_4 = arith.constant 0 : index
    %2 = vector.load %arg4[%c0_3, %c0_4] : memref<32x32xf32, #tpu.memory_space<vmem>>, vector<32x32xf32>
    %cst = arith.constant dense<0.000000e+00> : vector<8x32xf32>
    %3 = tpu.matmul %0, %2, %cst {dimension_numbers = #tpu.dot_dimension_numbers<[1], [0], [0], [1], [0, 0, 1, 1], [], []>} : vector<8x32xf32>, vector<32x32xf32>, vector<8x32xf32> -> vector<8x32xf32>
    %c0_5 = arith.constant 0 : index
    %c0_6 = arith.constant 0 : index
    %4 = vector.load %arg5[%c0_5, %c0_6] : memref<32x32xf32, #tpu.memory_space<vmem>>, vector<32x32xf32>
    %cst_7 = arith.constant dense<0.000000e+00> : vector<8x32xf32>
    %5 = tpu.matmul %1, %4, %cst_7 {dimension_numbers = #tpu.dot_dimension_numbers<[1], [0], [0], [1], [0, 0, 1, 1], [], []>} : vector<8x32xf32>, vector<32x32xf32>, vector<8x32xf32> -> vector<8x32xf32>
    %6 = arith.addf %3, %5 : vector<8x32xf32>
    %c0_8 = arith.constant 0 : index
    %c0_9 = arith.constant 0 : index
    %7 = vector.load %arg7[%c0_8, %c0_9] : memref<1x32xf32, #tpu.memory_space<vmem>>, vector<1x32xf32>
    %8 = vector.broadcast %7 : vector<1x32xf32> to vector<8x32xf32>
    %9 = arith.addf %6, %8 : vector<8x32xf32>
    %c0_10 = arith.constant 0 : index
    %c0_11 = arith.constant 0 : index
    %10 = vector.load %arg8[%c0_10, %c0_11] : memref<32x32xf32, #tpu.memory_space<vmem>>, vector<32x32xf32>
    %cst_12 = arith.constant dense<0.000000e+00> : vector<8x32xf32>
    %11 = tpu.matmul %0, %10, %cst_12 {dimension_numbers = #tpu.dot_dimension_numbers<[1], [0], [0], [1], [0, 0, 1, 1], [], []>} : vector<8x32xf32>, vector<32x32xf32>, vector<8x32xf32> -> vector<8x32xf32>
    %c0_13 = arith.constant 0 : index
    %c0_14 = arith.constant 0 : index
    %12 = vector.load %arg9[%c0_13, %c0_14] : memref<32x32xf32, #tpu.memory_space<vmem>>, vector<32x32xf32>
    %cst_15 = arith.constant dense<0.000000e+00> : vector<8x32xf32>
    %13 = tpu.matmul %1, %12, %cst_15 {dimension_numbers = #tpu.dot_dimension_numbers<[1], [0], [0], [1], [0, 0, 1, 1], [], []>} : vector<8x32xf32>, vector<32x32xf32>, vector<8x32xf32> -> vector<8x32xf32>
    %14 = arith.addf %11, %13 : vector<8x32xf32>
    %c0_16 = arith.constant 0 : index
    %c0_17 = arith.constant 0 : index
    %15 = vector.load %arg11[%c0_16, %c0_17] : memref<1x32xf32, #tpu.memory_space<vmem>>, vector<1x32xf32>
    %16 = vector.broadcast %15 : vector<1x32xf32> to vector<8x32xf32>
    %17 = arith.addf %14, %16 : vector<8x32xf32>
    %c0_18 = arith.constant 0 : index
    %c0_19 = arith.constant 0 : index
    %18 = vector.load %arg6[%c0_18, %c0_19] : memref<32x32xf32, #tpu.memory_space<vmem>>, vector<32x32xf32>
    %c0_20 = arith.constant 0 : index
    %c0_21 = arith.constant 0 : index
    %19 = vector.load %arg10[%c0_20, %c0_21] : memref<32x32xf32, #tpu.memory_space<vmem>>, vector<32x32xf32>
    %c0_22 = arith.constant 0 : index
    %c0_23 = arith.constant 0 : index
    %20 = vector.load %arg2[%c0_22, %c0_23] : memref<1x32xf32, #tpu.memory_space<vmem>>, vector<1x32xf32>
    %c0_24 = arith.constant 0 : index
    %c0_25 = arith.constant 0 : index
    %21 = vector.load %arg3[%c0_24, %c0_25] : memref<1x32xf32, #tpu.memory_space<vmem>>, vector<1x32xf32>
    %22 = vector.extract_strided_slice %9 {offsets = [0, 0], sizes = [1, 32], strides = [1, 1]} : vector<8x32xf32> to vector<1x32xf32>
    %cst_26 = arith.constant dense<0.000000e+00> : vector<1x32xf32>
    %23 = tpu.matmul %20, %18, %cst_26 {dimension_numbers = #tpu.dot_dimension_numbers<[1], [0], [0], [1], [0, 0, 1, 1], [], []>} : vector<1x32xf32>, vector<32x32xf32>, vector<1x32xf32> -> vector<1x32xf32>
    %24 = arith.addf %22, %23 : vector<1x32xf32>
    %25 = arith.negf %24 : vector<1x32xf32>
    %26 = math.exp %25 : vector<1x32xf32>
    %cst_27 = arith.constant 1.000000e+00 : f32
    %27 = vector.broadcast %cst_27 : f32 to vector<1x32xf32>
    %28 = arith.addf %27, %26 : vector<1x32xf32>
    %29 = arith.divf %27, %28 : vector<1x32xf32>
    %30 = vector.extract_strided_slice %17 {offsets = [0, 0], sizes = [1, 32], strides = [1, 1]} : vector<8x32xf32> to vector<1x32xf32>
    %cst_28 = arith.constant dense<0.000000e+00> : vector<1x32xf32>
    %31 = tpu.matmul %20, %19, %cst_28 {dimension_numbers = #tpu.dot_dimension_numbers<[1], [0], [0], [1], [0, 0, 1, 1], [], []>} : vector<1x32xf32>, vector<32x32xf32>, vector<1x32xf32> -> vector<1x32xf32>
    %32 = arith.addf %30, %31 : vector<1x32xf32>
    %33 = arith.negf %32 : vector<1x32xf32>
    %34 = math.exp %33 : vector<1x32xf32>
    %cst_29 = arith.constant 1.000000e+00 : f32
    %35 = vector.broadcast %cst_29 : f32 to vector<1x32xf32>
    %36 = arith.addf %35, %34 : vector<1x32xf32>
    %37 = arith.divf %35, %36 : vector<1x32xf32>
    %38 = arith.mulf %21, %37 : vector<1x32xf32>
    %39 = vector.extract_strided_slice %1 {offsets = [0, 0], sizes = [1, 32], strides = [1, 1]} : vector<8x32xf32> to vector<1x32xf32>
    %40 = arith.mulf %29, %39 : vector<1x32xf32>
    %41 = arith.addf %38, %40 : vector<1x32xf32>
    %42 = vector.extract_strided_slice %9 {offsets = [1, 0], sizes = [1, 32], strides = [1, 1]} : vector<8x32xf32> to vector<1x32xf32>
    %cst_30 = arith.constant dense<0.000000e+00> : vector<1x32xf32>
    %43 = tpu.matmul %41, %18, %cst_30 {dimension_numbers = #tpu.dot_dimension_numbers<[1], [0], [0], [1], [0, 0, 1, 1], [], []>} : vector<1x32xf32>, vector<32x32xf32>, vector<1x32xf32> -> vector<1x32xf32>
    %44 = arith.addf %42, %43 : vector<1x32xf32>
    %45 = arith.negf %44 : vector<1x32xf32>
    %46 = math.exp %45 : vector<1x32xf32>
    %cst_31 = arith.constant 1.000000e+00 : f32
    %47 = vector.broadcast %cst_31 : f32 to vector<1x32xf32>
    %48 = arith.addf %47, %46 : vector<1x32xf32>
    %49 = arith.divf %47, %48 : vector<1x32xf32>
    %50 = vector.extract_strided_slice %17 {offsets = [1, 0], sizes = [1, 32], strides = [1, 1]} : vector<8x32xf32> to vector<1x32xf32>
    %cst_32 = arith.constant dense<0.000000e+00> : vector<1x32xf32>
    %51 = tpu.matmul %41, %19, %cst_32 {dimension_numbers = #tpu.dot_dimension_numbers<[1], [0], [0], [1], [0, 0, 1, 1], [], []>} : vector<1x32xf32>, vector<32x32xf32>, vector<1x32xf32> -> vector<1x32xf32>
    %52 = arith.addf %50, %51 : vector<1x32xf32>
    %53 = arith.negf %52 : vector<1x32xf32>
    %54 = math.exp %53 : vector<1x32xf32>
    %cst_33 = arith.constant 1.000000e+00 : f32
    %55 = vector.broadcast %cst_33 : f32 to vector<1x32xf32>
    %56 = arith.addf %55, %54 : vector<1x32xf32>
    %57 = arith.divf %55, %56 : vector<1x32xf32>
    %58 = arith.mulf %41, %57 : vector<1x32xf32>
    %59 = vector.extract_strided_slice %1 {offsets = [1, 0], sizes = [1, 32], strides = [1, 1]} : vector<8x32xf32> to vector<1x32xf32>
    %60 = arith.mulf %49, %59 : vector<1x32xf32>
    %61 = arith.addf %58, %60 : vector<1x32xf32>
    %62 = vector.extract_strided_slice %9 {offsets = [2, 0], sizes = [1, 32], strides = [1, 1]} : vector<8x32xf32> to vector<1x32xf32>
    %cst_34 = arith.constant dense<0.000000e+00> : vector<1x32xf32>
    %63 = tpu.matmul %61, %18, %cst_34 {dimension_numbers = #tpu.dot_dimension_numbers<[1], [0], [0], [1], [0, 0, 1, 1], [], []>} : vector<1x32xf32>, vector<32x32xf32>, vector<1x32xf32> -> vector<1x32xf32>
    %64 = arith.addf %62, %63 : vector<1x32xf32>
    %65 = arith.negf %64 : vector<1x32xf32>
    %66 = math.exp %65 : vector<1x32xf32>
    %cst_35 = arith.constant 1.000000e+00 : f32
    %67 = vector.broadcast %cst_35 : f32 to vector<1x32xf32>
    %68 = arith.addf %67, %66 : vector<1x32xf32>
    %69 = arith.divf %67, %68 : vector<1x32xf32>
    %70 = vector.extract_strided_slice %17 {offsets = [2, 0], sizes = [1, 32], strides = [1, 1]} : vector<8x32xf32> to vector<1x32xf32>
    %cst_36 = arith.constant dense<0.000000e+00> : vector<1x32xf32>
    %71 = tpu.matmul %61, %19, %cst_36 {dimension_numbers = #tpu.dot_dimension_numbers<[1], [0], [0], [1], [0, 0, 1, 1], [], []>} : vector<1x32xf32>, vector<32x32xf32>, vector<1x32xf32> -> vector<1x32xf32>
    %72 = arith.addf %70, %71 : vector<1x32xf32>
    %73 = arith.negf %72 : vector<1x32xf32>
    %74 = math.exp %73 : vector<1x32xf32>
    %cst_37 = arith.constant 1.000000e+00 : f32
    %75 = vector.broadcast %cst_37 : f32 to vector<1x32xf32>
    %76 = arith.addf %75, %74 : vector<1x32xf32>
    %77 = arith.divf %75, %76 : vector<1x32xf32>
    %78 = arith.mulf %61, %77 : vector<1x32xf32>
    %79 = vector.extract_strided_slice %1 {offsets = [2, 0], sizes = [1, 32], strides = [1, 1]} : vector<8x32xf32> to vector<1x32xf32>
    %80 = arith.mulf %69, %79 : vector<1x32xf32>
    %81 = arith.addf %78, %80 : vector<1x32xf32>
    %82 = vector.extract_strided_slice %9 {offsets = [3, 0], sizes = [1, 32], strides = [1, 1]} : vector<8x32xf32> to vector<1x32xf32>
    %cst_38 = arith.constant dense<0.000000e+00> : vector<1x32xf32>
    %83 = tpu.matmul %81, %18, %cst_38 {dimension_numbers = #tpu.dot_dimension_numbers<[1], [0], [0], [1], [0, 0, 1, 1], [], []>} : vector<1x32xf32>, vector<32x32xf32>, vector<1x32xf32> -> vector<1x32xf32>
    %84 = arith.addf %82, %83 : vector<1x32xf32>
    %85 = arith.negf %84 : vector<1x32xf32>
    %86 = math.exp %85 : vector<1x32xf32>
    %cst_39 = arith.constant 1.000000e+00 : f32
    %87 = vector.broadcast %cst_39 : f32 to vector<1x32xf32>
    %88 = arith.addf %87, %86 : vector<1x32xf32>
    %89 = arith.divf %87, %88 : vector<1x32xf32>
    %90 = vector.extract_strided_slice %17 {offsets = [3, 0], sizes = [1, 32], strides = [1, 1]} : vector<8x32xf32> to vector<1x32xf32>
    %cst_40 = arith.constant dense<0.000000e+00> : vector<1x32xf32>
    %91 = tpu.matmul %81, %19, %cst_40 {dimension_numbers = #tpu.dot_dimension_numbers<[1], [0], [0], [1], [0, 0, 1, 1], [], []>} : vector<1x32xf32>, vector<32x32xf32>, vector<1x32xf32> -> vector<1x32xf32>
    %92 = arith.addf %90, %91 : vector<1x32xf32>
    %93 = arith.negf %92 : vector<1x32xf32>
    %94 = math.exp %93 : vector<1x32xf32>
    %cst_41 = arith.constant 1.000000e+00 : f32
    %95 = vector.broadcast %cst_41 : f32 to vector<1x32xf32>
    %96 = arith.addf %95, %94 : vector<1x32xf32>
    %97 = arith.divf %95, %96 : vector<1x32xf32>
    %98 = arith.mulf %81, %97 : vector<1x32xf32>
    %99 = vector.extract_strided_slice %1 {offsets = [3, 0], sizes = [1, 32], strides = [1, 1]} : vector<8x32xf32> to vector<1x32xf32>
    %100 = arith.mulf %89, %99 : vector<1x32xf32>
    %101 = arith.addf %98, %100 : vector<1x32xf32>
    %102 = vector.extract_strided_slice %9 {offsets = [4, 0], sizes = [1, 32], strides = [1, 1]} : vector<8x32xf32> to vector<1x32xf32>
    %cst_42 = arith.constant dense<0.000000e+00> : vector<1x32xf32>
    %103 = tpu.matmul %101, %18, %cst_42 {dimension_numbers = #tpu.dot_dimension_numbers<[1], [0], [0], [1], [0, 0, 1, 1], [], []>} : vector<1x32xf32>, vector<32x32xf32>, vector<1x32xf32> -> vector<1x32xf32>
    %104 = arith.addf %102, %103 : vector<1x32xf32>
    %105 = arith.negf %104 : vector<1x32xf32>
    %106 = math.exp %105 : vector<1x32xf32>
    %cst_43 = arith.constant 1.000000e+00 : f32
    %107 = vector.broadcast %cst_43 : f32 to vector<1x32xf32>
    %108 = arith.addf %107, %106 : vector<1x32xf32>
    %109 = arith.divf %107, %108 : vector<1x32xf32>
    %110 = vector.extract_strided_slice %17 {offsets = [4, 0], sizes = [1, 32], strides = [1, 1]} : vector<8x32xf32> to vector<1x32xf32>
    %cst_44 = arith.constant dense<0.000000e+00> : vector<1x32xf32>
    %111 = tpu.matmul %101, %19, %cst_44 {dimension_numbers = #tpu.dot_dimension_numbers<[1], [0], [0], [1], [0, 0, 1, 1], [], []>} : vector<1x32xf32>, vector<32x32xf32>, vector<1x32xf32> -> vector<1x32xf32>
    %112 = arith.addf %110, %111 : vector<1x32xf32>
    %113 = arith.negf %112 : vector<1x32xf32>
    %114 = math.exp %113 : vector<1x32xf32>
    %cst_45 = arith.constant 1.000000e+00 : f32
    %115 = vector.broadcast %cst_45 : f32 to vector<1x32xf32>
    %116 = arith.addf %115, %114 : vector<1x32xf32>
    %117 = arith.divf %115, %116 : vector<1x32xf32>
    %118 = arith.mulf %101, %117 : vector<1x32xf32>
    %119 = vector.extract_strided_slice %1 {offsets = [4, 0], sizes = [1, 32], strides = [1, 1]} : vector<8x32xf32> to vector<1x32xf32>
    %120 = arith.mulf %109, %119 : vector<1x32xf32>
    %121 = arith.addf %118, %120 : vector<1x32xf32>
    %122 = vector.extract_strided_slice %9 {offsets = [5, 0], sizes = [1, 32], strides = [1, 1]} : vector<8x32xf32> to vector<1x32xf32>
    %cst_46 = arith.constant dense<0.000000e+00> : vector<1x32xf32>
    %123 = tpu.matmul %121, %18, %cst_46 {dimension_numbers = #tpu.dot_dimension_numbers<[1], [0], [0], [1], [0, 0, 1, 1], [], []>} : vector<1x32xf32>, vector<32x32xf32>, vector<1x32xf32> -> vector<1x32xf32>
    %124 = arith.addf %122, %123 : vector<1x32xf32>
    %125 = arith.negf %124 : vector<1x32xf32>
    %126 = math.exp %125 : vector<1x32xf32>
    %cst_47 = arith.constant 1.000000e+00 : f32
    %127 = vector.broadcast %cst_47 : f32 to vector<1x32xf32>
    %128 = arith.addf %127, %126 : vector<1x32xf32>
    %129 = arith.divf %127, %128 : vector<1x32xf32>
    %130 = vector.extract_strided_slice %17 {offsets = [5, 0], sizes = [1, 32], strides = [1, 1]} : vector<8x32xf32> to vector<1x32xf32>
    %cst_48 = arith.constant dense<0.000000e+00> : vector<1x32xf32>
    %131 = tpu.matmul %121, %19, %cst_48 {dimension_numbers = #tpu.dot_dimension_numbers<[1], [0], [0], [1], [0, 0, 1, 1], [], []>} : vector<1x32xf32>, vector<32x32xf32>, vector<1x32xf32> -> vector<1x32xf32>
    %132 = arith.addf %130, %131 : vector<1x32xf32>
    %133 = arith.negf %132 : vector<1x32xf32>
    %134 = math.exp %133 : vector<1x32xf32>
    %cst_49 = arith.constant 1.000000e+00 : f32
    %135 = vector.broadcast %cst_49 : f32 to vector<1x32xf32>
    %136 = arith.addf %135, %134 : vector<1x32xf32>
    %137 = arith.divf %135, %136 : vector<1x32xf32>
    %138 = arith.mulf %121, %137 : vector<1x32xf32>
    %139 = vector.extract_strided_slice %1 {offsets = [5, 0], sizes = [1, 32], strides = [1, 1]} : vector<8x32xf32> to vector<1x32xf32>
    %140 = arith.mulf %129, %139 : vector<1x32xf32>
    %141 = arith.addf %138, %140 : vector<1x32xf32>
    %142 = vector.extract_strided_slice %9 {offsets = [6, 0], sizes = [1, 32], strides = [1, 1]} : vector<8x32xf32> to vector<1x32xf32>
    %cst_50 = arith.constant dense<0.000000e+00> : vector<1x32xf32>
    %143 = tpu.matmul %141, %18, %cst_50 {dimension_numbers = #tpu.dot_dimension_numbers<[1], [0], [0], [1], [0, 0, 1, 1], [], []>} : vector<1x32xf32>, vector<32x32xf32>, vector<1x32xf32> -> vector<1x32xf32>
    %144 = arith.addf %142, %143 : vector<1x32xf32>
    %145 = arith.negf %144 : vector<1x32xf32>
    %146 = math.exp %145 : vector<1x32xf32>
    %cst_51 = arith.constant 1.000000e+00 : f32
    %147 = vector.broadcast %cst_51 : f32 to vector<1x32xf32>
    %148 = arith.addf %147, %146 : vector<1x32xf32>
    %149 = arith.divf %147, %148 : vector<1x32xf32>
    %150 = vector.extract_strided_slice %17 {offsets = [6, 0], sizes = [1, 32], strides = [1, 1]} : vector<8x32xf32> to vector<1x32xf32>
    %cst_52 = arith.constant dense<0.000000e+00> : vector<1x32xf32>
    %151 = tpu.matmul %141, %19, %cst_52 {dimension_numbers = #tpu.dot_dimension_numbers<[1], [0], [0], [1], [0, 0, 1, 1], [], []>} : vector<1x32xf32>, vector<32x32xf32>, vector<1x32xf32> -> vector<1x32xf32>
    %152 = arith.addf %150, %151 : vector<1x32xf32>
    %153 = arith.negf %152 : vector<1x32xf32>
    %154 = math.exp %153 : vector<1x32xf32>
    %cst_53 = arith.constant 1.000000e+00 : f32
    %155 = vector.broadcast %cst_53 : f32 to vector<1x32xf32>
    %156 = arith.addf %155, %154 : vector<1x32xf32>
    %157 = arith.divf %155, %156 : vector<1x32xf32>
    %158 = arith.mulf %141, %157 : vector<1x32xf32>
    %159 = vector.extract_strided_slice %1 {offsets = [6, 0], sizes = [1, 32], strides = [1, 1]} : vector<8x32xf32> to vector<1x32xf32>
    %160 = arith.mulf %149, %159 : vector<1x32xf32>
    %161 = arith.addf %158, %160 : vector<1x32xf32>
    %162 = vector.extract_strided_slice %9 {offsets = [7, 0], sizes = [1, 32], strides = [1, 1]} : vector<8x32xf32> to vector<1x32xf32>
    %cst_54 = arith.constant dense<0.000000e+00> : vector<1x32xf32>
    %163 = tpu.matmul %161, %18, %cst_54 {dimension_numbers = #tpu.dot_dimension_numbers<[1], [0], [0], [1], [0, 0, 1, 1], [], []>} : vector<1x32xf32>, vector<32x32xf32>, vector<1x32xf32> -> vector<1x32xf32>
    %164 = arith.addf %162, %163 : vector<1x32xf32>
    %165 = arith.negf %164 : vector<1x32xf32>
    %166 = math.exp %165 : vector<1x32xf32>
    %cst_55 = arith.constant 1.000000e+00 : f32
    %167 = vector.broadcast %cst_55 : f32 to vector<1x32xf32>
    %168 = arith.addf %167, %166 : vector<1x32xf32>
    %169 = arith.divf %167, %168 : vector<1x32xf32>
    %170 = vector.extract_strided_slice %17 {offsets = [7, 0], sizes = [1, 32], strides = [1, 1]} : vector<8x32xf32> to vector<1x32xf32>
    %cst_56 = arith.constant dense<0.000000e+00> : vector<1x32xf32>
    %171 = tpu.matmul %161, %19, %cst_56 {dimension_numbers = #tpu.dot_dimension_numbers<[1], [0], [0], [1], [0, 0, 1, 1], [], []>} : vector<1x32xf32>, vector<32x32xf32>, vector<1x32xf32> -> vector<1x32xf32>
    %172 = arith.addf %170, %171 : vector<1x32xf32>
    %173 = arith.negf %172 : vector<1x32xf32>
    %174 = math.exp %173 : vector<1x32xf32>
    %cst_57 = arith.constant 1.000000e+00 : f32
    %175 = vector.broadcast %cst_57 : f32 to vector<1x32xf32>
    %176 = arith.addf %175, %174 : vector<1x32xf32>
    %177 = arith.divf %175, %176 : vector<1x32xf32>
    %178 = arith.mulf %161, %177 : vector<1x32xf32>
    %179 = vector.extract_strided_slice %1 {offsets = [7, 0], sizes = [1, 32], strides = [1, 1]} : vector<8x32xf32> to vector<1x32xf32>
    %180 = arith.mulf %169, %179 : vector<1x32xf32>
    %181 = arith.addf %178, %180 : vector<1x32xf32>
    %182 = tpu.concatenate %41, %61, %81, %101, %121, %141, %161, %181 in 0 : vector<1x32xf32>, vector<1x32xf32>, vector<1x32xf32>, vector<1x32xf32>, vector<1x32xf32>, vector<1x32xf32>, vector<1x32xf32>, vector<1x32xf32> -> vector<8x32xf32>
    %c0_58 = arith.constant 0 : index
    %c0_59 = arith.constant 0 : index
    %183 = vector.load %arg16[%c0_58, %c0_59] : memref<8x32xf32, #tpu.memory_space<vmem>>, vector<8x32xf32>
    tpu.vector_store %arg16[%c0_58, %c0_59], %182 {strides = array<i32>} : memref<8x32xf32, #tpu.memory_space<vmem>>, vector<8x32xf32>,
    %c0_60 = arith.constant 0 : index
    %c0_61 = arith.constant 0 : index
    %184 = vector.load %arg12[%c0_60, %c0_61] : memref<32x128xf32, #tpu.memory_space<vmem>>, vector<32x128xf32>
    %cst_62 = arith.constant dense<0.000000e+00> : vector<8x128xf32>
    %185 = tpu.matmul %182, %184, %cst_62 {dimension_numbers = #tpu.dot_dimension_numbers<[1], [0], [0], [1], [0, 0, 1, 1], [], []>} : vector<8x32xf32>, vector<32x128xf32>, vector<8x128xf32> -> vector<8x128xf32>
    %c0_63 = arith.constant 0 : index
    %c0_64 = arith.constant 0 : index
    %186 = vector.load %arg13[%c0_63, %c0_64] : memref<32x128xf32, #tpu.memory_space<vmem>>, vector<32x128xf32>
    %cst_65 = arith.constant dense<0.000000e+00> : vector<8x128xf32>
    %187 = tpu.matmul %1, %186, %cst_65 {dimension_numbers = #tpu.dot_dimension_numbers<[1], [0], [0], [1], [0, 0, 1, 1], [], []>} : vector<8x32xf32>, vector<32x128xf32>, vector<8x128xf32> -> vector<8x128xf32>
    %188 = arith.addf %185, %187 : vector<8x128xf32>
    %c0_66 = arith.constant 0 : index
    %c0_67 = arith.constant 0 : index
    %189 = vector.load %arg14[%c0_66, %c0_67] : memref<1x128xf32, #tpu.memory_space<vmem>>, vector<1x128xf32>
    %190 = vector.broadcast %189 : vector<1x128xf32> to vector<8x128xf32>
    %191 = arith.addf %188, %190 : vector<8x128xf32>
    %cst_68 = arith.constant dense<0xFF800000> : vector<8xf32>
    %192 = vector.multi_reduction <maximumf>, %191, %cst_68 [1] : vector<8x128xf32> to vector<8xf32>
    %193 = vector.shape_cast %192 : vector<8xf32> to vector<8x1xf32>
    %194 = vector.broadcast %193 : vector<8x1xf32> to vector<8x128xf32>
    %195 = arith.subf %191, %194 : vector<8x128xf32>
    %196 = math.exp %195 : vector<8x128xf32>
    %cst_69 = arith.constant dense<0.000000e+00> : vector<8xf32>
    %197 = vector.multi_reduction <add>, %196, %cst_69 [1] : vector<8x128xf32> to vector<8xf32>
    %198 = vector.shape_cast %197 : vector<8xf32> to vector<8x1xf32>
    %199 = math.log %198 : vector<8x1xf32>
    %200 = vector.broadcast %199 : vector<8x1xf32> to vector<8x128xf32>
    %201 = arith.subf %195, %200 : vector<8x128xf32>
    %c0_70 = arith.constant 0 : index
    %c0_71 = arith.constant 0 : index
    %202 = vector.load %arg15[%c0_70, %c0_71] : memref<8x128xf32, #tpu.memory_space<vmem>>, vector<8x128xf32>
    tpu.vector_store %arg15[%c0_70, %c0_71], %201 {strides = array<i32>} : memref<8x128xf32, #tpu.memory_space<vmem>>, vector<8x128xf32>,
    return
  }
}

</mosaic_0001>

<bundles_post_ra>
// kernel: tpu_custom_call.1
= control target key start
LH: loop header
LB: loop body
LE: loop exit
PB: predicated region body
PF: predicated region fallthrough
CT: control target
= control target key end

     0   :  { %s2045_s0 = inlined_call_operand.hbm [shape: f32[8,32], index: 0, kind: input, shape index: {}]   ;;  %s2046_s1 = inlined_call_operand.hbm [shape: f32[8,32], index: 1, kind: input, shape index: {}]   ;;  %s2047_s2 = inlined_call_operand.vmem [shape: f32[1,32], index: 2, kind: input, shape index: {}]   ;;  %s2048_s3 = inlined_call_operand.vmem [shape: f32[1,32], index: 3, kind: input, shape index: {}]   ;;  %s2049_s4 = inlined_call_operand.hbm [shape: f32[32,32], index: 4, kind: input, shape index: {}]   ;;  %s2050_s5 = inlined_call_operand.hbm [shape: f32[32,32], index: 5, kind: input, shape index: {}]   ;;  %s2051_s6 = inlined_call_operand.hbm [shape: f32[32,32], index: 6, kind: input, shape index: {}]   ;;  %s2052_s7 = inlined_call_operand.vmem [shape: f32[1,32], index: 7, kind: input, shape index: {}]   ;;  %s2053_s8 = inlined_call_operand.hbm [shape: f32[32,32], index: 8, kind: input, shape index: {}]   ;;  %s2054_s9 = inlined_call_operand.hbm [shape: f32[32,32], index: 9, kind: input, shape index: {}]   ;;  %s2055_s10 = inlined_call_operand.hbm [shape: f32[32,32], index: 10, kind: input, shape index: {}]   ;;  %s2056_s11 = inlined_call_operand.vmem [shape: f32[1,32], index: 11, kind: input, shape index: {}]   ;;  %s2057_s12 = inlined_call_operand.hbm [shape: f32[32,128], index: 12, kind: input, shape index: {}]   ;;  %s2058_s13 = inlined_call_operand.hbm [shape: f32[32,128], index: 13, kind: input, shape index: {}]   ;;  %s2059_s14 = inlined_call_operand.vmem [shape: f32[1,128], index: 14, kind: input, shape index: {}]   ;;  %s2060_s15 = inlined_call_operand.hbm [shape: f32[8,128], index: 15, kind: output, shape index: {0}]   ;;  %s2061_s16 = inlined_call_operand.hbm [shape: f32[8,32], index: 16, kind: output, shape index: {1}]  }
   0x1   :  { %2062 = sst [smem:[#allocation30_spill]] %s2045_s0 }
   0x2   :  { %22 = vsyncpa [#allocation3], 0 }
   0x3   :  { %23 = vsyncpa [#allocation6], 0 }
   0x4   :  { %24 = vsyncpa [#allocation9], 0 }
   0x5   :  { %25 = vsyncpa [#allocation12], 0 }
   0x6   :  { %26 = vsyncpa [#allocation15], 0 }
   0x7   :  { %27 = vsyncpa [#allocation18], 0 }
   0x8   :  { %28 = vsyncpa [#allocation4], 0  ;;  %s46_s23 = sshll.u32 %s2046_s1, 4  ;;  %s47_s23 = int_to_ptr.hbm [resolvable:$true] %s46_s23 }
   0x9   :  { %29 = vsyncpa [#allocation21], 0  ;;  %s1694_s24 = smov [#allocation5]   ;;  %s73_s28 = sshll.u32 %s2050_s5, 4  ;;  %s74_s28 = int_to_ptr.hbm [resolvable:$true] %s73_s28 }
   0xa   :  { %s48_s25 = sshll.u32 %s1694_s24, 4  ;;  %s1695_s29 = smov [#allocation8]   ;;  %s49_s25 = int_to_ptr.vmem [resolvable:$true] %s48_s25 }
   0xb   :  { %51 = dma.hbm_to_vmem [thread:$0]  %s47_s23, 128, %s49_s25, [#allocation6]  }
   0xc   :  { %s75_s30 = sshll.u32 %s1695_s29, 4  ;;  %s101_s18 = sshll.u32 %s2053_s8, 4  ;;  %s76_s30 = int_to_ptr.vmem [resolvable:$true] %s75_s30  ;;  %s102_s18 = int_to_ptr.hbm [resolvable:$true] %s101_s18 }
   0xd   :  { %s1696_s1 = smov 128   ;;  %s1697_s19 = smov 8  }
   0xe   :  { %81 = dma.hbm_to_vmem [thread:$0]  %s74_s28, 512, %s76_s30, [#allocation9], %s1696_s1, %s1696_s1, %s1697_s19  }
   0xf   :  { %s127_s22 = sshll.u32 %s2055_s10, 4  ;;  %s1698_s5 = smov [#allocation11]   ;;  %s128_s22 = int_to_ptr.hbm [resolvable:$true] %s127_s22 }
  0x10   :  { %s103_s23 = sshll.u32 %s1698_s5, 4  ;;  %s1699_s8 = smov [#allocation14]   ;;  %s104_s23 = int_to_ptr.vmem [resolvable:$true] %s103_s23 }
  0x11   :  { %109 = dma.hbm_to_vmem [thread:$0]  %s102_s18, 512, %s104_s23, [#allocation12], %s1696_s1, %s1696_s1, %s1697_s19  }
  0x12   :  { %s129_s24 = sshll.u32 %s1699_s8, 4  ;;  %s2063_s27 = sld [smem:[#allocation30_spill]]  ;;  %s130_s24 = int_to_ptr.vmem [resolvable:$true] %s129_s24 }
  0x13   :  { %135 = dma.hbm_to_vmem [thread:$0]  %s128_s22, 512, %s130_s24, [#allocation15], %s1696_s1, %s1696_s1, %s1697_s19  }
  0x14   :  { %s60_s30 = sshll.u32 %s2049_s4, 4  ;;  %s1700_s0 = smov [#allocation2]   ;;  %s61_s30 = int_to_ptr.hbm [resolvable:$true] %s60_s30 }
  0x15   :  { %s37_s17 = sshll.u32 %s1700_s0, 4  ;;  %s1701_s18 = smov [#allocation7]   ;;  %s38_s17 = int_to_ptr.vmem [resolvable:$true] %s37_s17 }
  0x16   :  { %s62_s20 = sshll.u32 %s1701_s18, 4  ;;  %s86_s23 = sshll.u32 %s2051_s6, 4  ;;  %s63_s20 = int_to_ptr.vmem [resolvable:$true] %s62_s20  ;;  %s87_s23 = int_to_ptr.hbm [resolvable:$true] %s86_s23 }
  0x17   :  { %68 = dma.hbm_to_vmem [thread:$0]  %s61_s30, 512, %s63_s20, [#allocation6], %s1696_s1, %s1696_s1, %s1697_s19  }
  0x18   :  { %s35_s29 = sshll.u32 %s2063_s27, 4  ;;  %s114_s4 = sshll.u32 %s2054_s9, 4  ;;  %s36_s29 = int_to_ptr.hbm [resolvable:$true] %s35_s29  ;;  %s115_s4 = int_to_ptr.hbm [resolvable:$true] %s114_s4 }
  0x19   :  { %40 = dma.hbm_to_vmem [thread:$0]  %s36_s29, 128, %s38_s17, [#allocation3]  }
  0x1a   :  { %s1702_s24 = smov [#allocation10]   ;;  %s1703_s26 = smov [#allocation13]  }
  0x1b   :  { %s88_s25 = sshll.u32 %s1702_s24, 4  ;;  %s116_s6 = sshll.u32 %s1703_s26, 4  ;;  %s89_s25 = int_to_ptr.vmem [resolvable:$true] %s88_s25  ;;  %s117_s6 = int_to_ptr.vmem [resolvable:$true] %s116_s6 }
  0x1c   :  { %94 = dma.hbm_to_vmem [thread:$0]  %s87_s23, 512, %s89_s25, [#allocation9], %s1696_s1, %s1696_s1, %s1697_s19  }
  0x1d   :  { %s142_s10 = sshll.u32 %s2057_s12, 4  ;;  %s155_s30 = sshll.u32 %s2058_s13, 4  ;;  %s143_s10 = int_to_ptr.hbm [resolvable:$true] %s142_s10  ;;  %s156_s30 = int_to_ptr.hbm [resolvable:$true] %s155_s30 }
  0x1e   :  { %122 = dma.hbm_to_vmem [thread:$0]  %s115_s4, 512, %s117_s6, [#allocation12], %s1696_s1, %s1696_s1, %s1697_s19  }
  0x1f   :  { %s1704_s0 = smov [#allocation16]   ;;  %s1705_s18 = smov [#allocation17]  }
  0x20   :  { %s144_s17 = sshll.u32 %s1704_s0, 4  ;;  %s157_s12 = sshll.u32 %s1705_s18, 4  ;;  %s145_s17 = int_to_ptr.vmem [resolvable:$true] %s144_s17  ;;  %s158_s12 = int_to_ptr.vmem [resolvable:$true] %s157_s12 }
  0x21   :  { %150 = dma.hbm_to_vmem [thread:$0]  %s143_s10, 512, %s145_s17, [#allocation15], %s1696_s1, %s1696_s1, %s1697_s19  }
  0x22   :  { %163 = dma.hbm_to_vmem [thread:$0]  %s156_s30, 512, %s158_s12, [#allocation18], %s1696_s1, %s1696_s1, %s1697_s19  }
  0x23   :  { %1678 = dma.done.wait [#allocation3], 128  }
  0x24   :  { %1679 = vsyncadd [#allocation3], 4294967168 }
  0x25   :  { %1680 = dma.done.wait [#allocation6], 640  }
  0x26   :  { %1681 = vsyncadd [#allocation6], 4294966656 }
  0x27   :  { %1682 = dma.done.wait [#allocation9], 1024  }
  0x28   :  { %1683 = vsyncadd [#allocation9], 4294966272 }
  0x29   :  { %1684 = dma.done.wait [#allocation12], 1024  }
  0x2a   :  { %1685 = vsyncadd [#allocation12], 4294966272 }
  0x2b   :  { %1686 = dma.done.wait [#allocation15], 1024  }
  0x2c   :  { %1687 = vsyncadd [#allocation15], 4294966272 }
  0x2d   :  { %1688 = dma.done.wait [#allocation18], 512  }
  0x2e   :  { %1689 = vsyncadd [#allocation18], 4294966784  ;;  %v215_v0 = vld [vmem:[#allocation8 + $0x18] sm:$0xff]  ;;  %v214_v3 = vld [vmem:[#allocation8 + $0x10] sm:$0xff]  ;;  %vm216_vm0 = vcmask 261120   ;;  %s1706_s23 = smov [#allocation20]  }
  0x2f   :  { %v275_v1 = vld [vmem:[#allocation13 + $0x18] sm:$0xff]  ;;  %232 = vmatpush.msra.mxu0 %v215_v0  ;;  %v274_v5 = vld [vmem:[#allocation13 + $0x10] sm:$0xff]  ;;  %v213_v7 = vld [vmem:[#allocation8 + $0x8] sm:$0xff]  ;;  %s1244_s22 = sshll.u32 %s1706_s23, 4  ;;  %s1246_s24 = sshll.u32 %s2061_s16, 4  ;;  %s1245_s22 = int_to_ptr.vmem [resolvable:$true] %s1244_s22  ;;  %s1247_s24 = int_to_ptr.hbm [resolvable:$true] %s1246_s24 }
  0x30   :  { %v271_v2 = vld [vmem:[#allocation11 + $0x18] sm:$0xff]  ;;  %288 = vmatpush.msra.mxu2 %v275_v1  ;;  %v270_v6 = vld [vmem:[#allocation11 + $0x10] sm:$0xff]  ;;  %v273_v9 = vld [vmem:[#allocation13 + $0x8] sm:$0xff]  ;;  %s1235_s27 = sshll.u32 %s2060_s15, 4  ;;  %s1236_s27 = int_to_ptr.hbm [resolvable:$true] %s1235_s27 }
  0x31   :  { %v211_v4 = vld [vmem:[#allocation7 + $0x18] sm:$0xff]  ;;  %308 = vmatpush.msra.mxu3 %v271_v2  ;;  %v210_v8 = vld [vmem:[#allocation7 + $0x10] sm:$0xff]  ;;  %233 = vmatpush.msra.mxu0 %v214_v3  ;;  %v269_v10 = vld [vmem:[#allocation11 + $0x8] sm:$0xff] }
  0x32   :  { %255 = vmatpush.msra.mxu1 %v211_v4  ;;  %289 = vmatpush.msra.mxu2 %v274_v5  ;;  %v212_v11 = vld [vmem:[#allocation8] sm:$0xff]  ;;  %v209_v12 = vld [vmem:[#allocation7 + $0x8] sm:$0xff]  ;;  %v1847_v15 = vld [vmem:[#allocation5] sm:$0xff] }
  0x33   :  { %309 = vmatpush.msra.mxu3 %v270_v6  ;;  %v272_v13 = vld [vmem:[#allocation13] sm:$0xff]  ;;  %234 = vmatpush.msra.mxu0 %v213_v7  ;;  %v206_v16 = vld [vmem:[#allocation2] sm:$0xff]  ;;  %v1849_v18 = vld [vmem:[#allocation10 + $0x18] sm:$0xff] }
  0x34   :  { %256 = vmatpush.msra.mxu1 %v210_v8  ;;  %290 = vmatpush.msra.mxu2 %v273_v9  ;;  %v268_v14 = vld [vmem:[#allocation11] sm:$0xff]  ;;  %v1853_v19 = vld [vmem:[#allocation14 + $0x18] sm:$0xff]  ;;  %v1855_v20 = vld [vmem:[#allocation10 + $0x10] sm:$0xff] }
  0x35   :  { %310 = vmatpush.msra.mxu3 %v269_v10  ;;  %235 = vmatpush.msra.mxu0 %v212_v11  ;;  %v208_v17 = vld [vmem:[#allocation7] sm:$0xff]  ;;  %v1862_v21 = vld [vmem:[#allocation14 + $0x10] sm:$0xff]  ;;  %v1864_v22 = vld [vmem:[#allocation10 + $0x8] sm:$0xff] }
  0x36   :  { %257 = vmatpush.msra.mxu1 %v209_v12  ;;  %291 = vmatpush.msra.mxu2 %v272_v13  ;;  %v1869_v23 = vld [vmem:[#allocation14 + $0x8] sm:$0xff]  ;;  %v1871_v24 = vld [vmem:[#allocation10] sm:$0xff] }
  0x37   :  { %311 = vmatpush.msra.mxu3 %v268_v14  ;;  %1266 = vmatmul.msk.f32.vlgmr.msra.gmra.mxu0 %vm216_vm0, %v1847_v15  ;;  %v329_v25 = vld [vmem:[%s2047_s2] sm:$0x1]  ;;  %v1880_v26 = vld [vmem:[#allocation14] sm:$0xff] }
  0x38   :  { %1268 = vmatmul.msk.f32.vlgmr.msra.gmra.mxu2 %vm216_vm0, %v1847_v15  ;;  %1269 = vmatmul.msk.f32.vlgmr.msra.gmra.mxu3 %vm216_vm0, %v206_v16  ;;  %v1318_v30 = vld [vmem:[%s2052_s7] ss:$0 sm:$0xff] }
  0x39   :  { %258 = vmatpush.msra.mxu1 %v208_v17  ;;  %346 = vmatpush.msrb.mxu0 %v1849_v18  ;;  %v1319_v31 = vld [vmem:[%s2056_s11] ss:$0 sm:$0xff] }
  0x3a   :  { %1267 = vmatmul.msk.f32.vlgmr.msra.gmra.mxu1 %vm216_vm0, %v206_v16  ;;  %475 = vmatpush.msrb.mxu3 %v1853_v19  ;;  %v330_v63 = vld [vmem:[%s2048_s3] sm:$0x1] }
  0x3b   :  { %386 = vmatpush.msrb.mxu1 %v1853_v19  ;;  %347 = vmatpush.msrb.mxu0 %v1855_v20 }
  0x3c   :  { %432 = vmatpush.msrb.mxu2 %v1849_v18  ;;  %476 = vmatpush.msrb.mxu3 %v1862_v21 }
  0x3d   :  { %387 = vmatpush.msrb.mxu1 %v1862_v21  ;;  %348 = vmatpush.msrb.mxu0 %v1864_v22 }
  0x3e   :  { %433 = vmatpush.msrb.mxu2 %v1855_v20  ;;  %477 = vmatpush.msrb.mxu3 %v1869_v23 }
  0x3f   :  { %388 = vmatpush.msrb.mxu1 %v1869_v23  ;;  %349 = vmatpush.msrb.mxu0 %v1871_v24 }
  0x40   :  { %1270 = vmatmul.msk.f32.vlgmr.msrb.gmra.mxu0 %vm216_vm0, %v329_v25  ;;  %434 = vmatpush.msrb.mxu2 %v1864_v22 }
  0x41   :  { %389 = vmatpush.msrb.mxu1 %v1880_v26  ;;  %478 = vmatpush.msrb.mxu3 %v1880_v26 }
  0x42   :  { %1272 = vmatmul.msk.f32.vlgmr.msrb.gmra.mxu1 %vm216_vm0, %v329_v25  ;;  %435 = vmatpush.msrb.mxu2 %v1871_v24 }
  0x43   :  { %577 = vmatpush.msra.mxu1 %v1853_v19  ;;  %534 = vmatpush.msra.mxu0 %v1849_v18 }
  0x44   :  { %679 = vmatpush.msra.mxu3 %v1853_v19  ;;  %636 = vmatpush.msra.mxu2 %v1849_v18 }
  0x45   :  { %578 = vmatpush.msra.mxu1 %v1862_v21  ;;  %535 = vmatpush.msra.mxu0 %v1855_v20 }
  0x46   :  { %680 = vmatpush.msra.mxu3 %v1862_v21  ;;  %637 = vmatpush.msra.mxu2 %v1855_v20 }
  0x47   :  { %579 = vmatpush.msra.mxu1 %v1869_v23  ;;  %536 = vmatpush.msra.mxu0 %v1864_v22 }
  0x48   :  { %681 = vmatpush.msra.mxu3 %v1869_v23  ;;  %638 = vmatpush.msra.mxu2 %v1864_v22 }
  0x49   :  { %580 = vmatpush.msra.mxu1 %v1880_v26  ;;  %537 = vmatpush.msra.mxu0 %v1871_v24 }
  0x4a   :  { %682 = vmatpush.msra.mxu3 %v1880_v26  ;;  %639 = vmatpush.msra.mxu2 %v1871_v24 }
  0x4b   :  { %781 = vmatpush.msrb.mxu1 %v1853_v19  ;;  %738 = vmatpush.msrb.mxu0 %v1849_v18 }
  0x4d   :  { %782 = vmatpush.msrb.mxu1 %v1862_v21  ;;  %739 = vmatpush.msrb.mxu0 %v1855_v20 }
  0x4f   :  { %783 = vmatpush.msrb.mxu1 %v1869_v23  ;;  %740 = vmatpush.msrb.mxu0 %v1864_v22 }
  0x51   :  { %784 = vmatpush.msrb.mxu1 %v1880_v26  ;;  %741 = vmatpush.msrb.mxu0 %v1871_v24 }
  0xb4   :  { %v237_v27 = vpop.f32.mrf.mxu0 }
  0xb7   :  { %v260_v28 = vpop.f32.mrf.mxu1 }
  0xb8   :  { %v261_v29 = vadd.f32 %v260_v28, %v237_v27 }
  0xba   :  { %v1922_v34 = vadd.f32 %v1318_v30, %v261_v29 }
  0xbb   :  { %v293_v32 = vpop.f32.mrf.mxu2  ;;  %v313_v33 = vpop.f32.mrf.mxu3 }
  0xbc   :  { %v314_v35 = vadd.f32 %v313_v33, %v293_v32 }
  0xbd   :  { %v351_v36 = vpop.f32.mrf.mxu0 }
  0xbe   :  { %v1924_v37 = vadd.f32 %v1319_v31, %v314_v35  ;;  %v354_v38 = vadd.f32 %v351_v36, %v1922_v34 }
  0xbf   :  { %v391_v39 = vpop.f32.mrf.mxu1 }
  0xc0   :  { %v1271_v40 = vmul.f32 -1.442695, %v354_v38  ;;  %v394_v41 = vadd.f32 %v391_v39, %v1924_v37 }
  0xc2   :  { %1321 = vpow2.f32 %v1271_v40  ;;  %v1273_v42 = vmul.f32 -1.442695, %v394_v41 }
  0xc4   :  { %1323 = vpow2.f32 %v1273_v42 }
  0xc8   :  { %v1322_v43 = vpop.eup %1321 }
  0xc9   :  { %v358_v44 = vadd.f32 1.0, %v1322_v43 }
  0xca   :  { %v1324_v45 = vpop.eup %1323 }
  0xcb   :  { %1325 = vrcp.f32 %v358_v44  ;;  %v398_v46 = vadd.f32 1.0, %v1324_v45  ;;  %v370_v52 = vand.u32 2147483648, %v358_v44  ;;  %v368_v55 = vand.u32 2147483647, %v358_v44 }
  0xcc   :  { %vm364_vm2 = vweird.f32 %v358_v44 }
  0xcd   :  { %1327 = vrcp.f32 %v398_v46  ;;  %v410_v56 = vand.u32 2147483648, %v398_v46  ;;  %v408_v59 = vand.u32 2147483647, %v398_v46  ;;  %v371_v60 = vor.u32 1.1754944e-38, %v370_v52 }
  0xce   :  { %vm404_vm5 = vweird.f32 %v398_v46  ;;  %vm369_vm6 = vcmp.eq.f32.partialorder %v368_v55, 8.507059e+37 }
  0xcf   :  { %v411_v1 = vor.u32 1.1754944e-38, %v410_v56  ;;  %vm409_vm8 = vcmp.eq.f32.partialorder %v408_v59, 8.507059e+37 }
  0xd1   :  { %v1326_v47 = vpop.eup %1325 }
  0xd2   :  { %v360_v48 = vmul.f32 %v1326_v47, %v358_v44  ;;  %vm365_vm1 = vweird.f32 %v1326_v47 }
  0xd3   :  { %v1328_v49 = vpop.eup %1327  ;;  %vm366_vm4 = vmor %vm364_vm2, %vm365_vm1 }
  0xd4   :  { %v361_v50 = vsub.f32 1.0, %v360_v48  ;;  %v400_v51 = vmul.f32 %v1328_v49, %v398_v46  ;;  %vm405_vm3 = vweird.f32 %v1328_v49 }
  0xd5   :  { %vm406_vm7 = vmor %vm404_vm5, %vm405_vm3 }
  0xd6   :  { %v362_v53 = vmul.f32 %v1326_v47, %v361_v50  ;;  %v401_v54 = vsub.f32 1.0, %v400_v51 }
  0xd8   :  { %v402_v57 = vmul.f32 %v1328_v49, %v401_v54  ;;  %v363_v58 = vadd.f32 %v1326_v47, %v362_v53 }
  0xda   :  { %v367_v61 = vsel %vm366_vm4, %v1326_v47, %v363_v58  ;;  %v403_v62 = vadd.f32 %v1328_v49, %v402_v57 }
  0xdb   :  { %v372_v0 = vsel %vm369_vm6, %v371_v60, %v367_v61 }
  0xdc   :  { %v407_v2 = vsel %vm406_vm7, %v1328_v49, %v403_v62  ;;  %v415_v5 = vmul.f32 %v372_v0, %v1847_v15 }
  0xdd   :  { %v412_v3 = vsel %vm409_vm8, %v411_v1, %v407_v2 }
  0xde   :  { %v414_v4 = vmul.f32 %v412_v3, %v330_v63 }
  0xe0   :  { %v1932_v6 = vadd.f32 %v415_v5, %v414_v4 }
  0xe2   :  { %1274 = vmatmul.msk.f32.vlgmr.msrb.gmra.mxu2 %vm216_vm0, %v1932_v6  ;;  %1276 = vmatmul.msk.f32.vlgmr.msrb.gmra.mxu3 %vm216_vm0, %v1932_v6 }
  0xe3   :  { %883 = vmatpush.msrb.mxu3 %v1853_v19  ;;  %840 = vmatpush.msrb.mxu2 %v1849_v18 }
  0xe5   :  { %884 = vmatpush.msrb.mxu3 %v1862_v21  ;;  %841 = vmatpush.msrb.mxu2 %v1855_v20 }
  0xe7   :  { %885 = vmatpush.msrb.mxu3 %v1869_v23  ;;  %842 = vmatpush.msrb.mxu2 %v1864_v22 }
  0xe9   :  { %886 = vmatpush.msrb.mxu3 %v1880_v26  ;;  %843 = vmatpush.msrb.mxu2 %v1871_v24 }
 0x165   :  { %v437_v7 = vpop.f32.mrf.mxu2  ;;  %v480_v8 = vpop.f32.mrf.mxu3 }
 0x166   :  { %v441_v9 = vrot.slane %v437_v7, 7  ;;  %v484_v10 = vrot.slane %v480_v8, 7 }
 0x168   :  { %v443_v11 = vadd.f32 %v441_v9, %v1922_v34  ;;  %v486_v12 = vadd.f32 %v484_v10, %v1924_v37 }
 0x16a   :  { %v1275_v13 = vmul.f32 -1.442695, %v443_v11  ;;  %v1277_v14 = vmul.f32 -1.442695, %v486_v12 }
 0x16c   :  { %1329 = vpow2.f32 %v1275_v13 }
 0x16d   :  { %1331 = vpow2.f32 %v1277_v14 }
 0x172   :  { %v1330_v16 = vpop.eup %1329 }
 0x173   :  { %v1332_v17 = vpop.eup %1331  ;;  %v447_v25 = vadd.f32 1.0, %v1330_v16 }
 0x174   :  { %v490_v27 = vadd.f32 1.0, %v1332_v17 }
 0x175   :  { %1333 = vrcp.f32 %v447_v25  ;;  %v459_v42 = vand.u32 2147483648, %v447_v25  ;;  %vm453_vm13 = vweird.f32 %v447_v25  ;;  %v457_v44 = vand.u32 2147483647, %v447_v25 }
 0x176   :  { %1335 = vrcp.f32 %v490_v27  ;;  %v502_v36 = vand.u32 2147483648, %v490_v27  ;;  %v500_v39 = vand.u32 2147483647, %v490_v27  ;;  %vm496_vm11 = vweird.f32 %v490_v27 }
 0x177   :  { %v460_v48 = vor.u32 1.1754944e-38, %v459_v42  ;;  %vm458_vm1 = vcmp.eq.f32.partialorder %v457_v44, 8.507059e+37 }
 0x178   :  { %v503_v43 = vor.u32 1.1754944e-38, %v502_v36  ;;  %vm501_vm14 = vcmp.eq.f32.partialorder %v500_v39, 8.507059e+37 }
 0x17b   :  { %v1334_v28 = vpop.eup %1333 }
 0x17c   :  { %v1336_v29 = vpop.eup %1335  ;;  %v449_v30 = vmul.f32 %v1334_v28, %v447_v25  ;;  %vm454_vm10 = vweird.f32 %v1334_v28 }
 0x17d   :  { %v492_v31 = vmul.f32 %v1336_v29, %v490_v27  ;;  %vm497_vm9 = vweird.f32 %v1336_v29  ;;  %vm455_vm15 = vmor %vm453_vm13, %vm454_vm10 }
 0x17e   :  { %v450_v32 = vsub.f32 1.0, %v449_v30  ;;  %vm498_vm12 = vmor %vm496_vm11, %vm497_vm9 }
 0x17f   :  { %v493_v33 = vsub.f32 1.0, %v492_v31 }
 0x180   :  { %v451_v35 = vmul.f32 %v1334_v28, %v450_v32 }
 0x181   :  { %v494_v38 = vmul.f32 %v1336_v29, %v493_v33 }
 0x182   :  { %v452_v40 = vadd.f32 %v1334_v28, %v451_v35 }
 0x183   :  { %v495_v41 = vadd.f32 %v1336_v29, %v494_v38 }
 0x184   :  { %v456_v47 = vsel %vm455_vm15, %v1334_v28, %v452_v40 }
 0x185   :  { %v499_v45 = vsel %vm498_vm12, %v1336_v29, %v495_v41  ;;  %v461_v49 = vsel %vm458_vm1, %v460_v48, %v456_v47 }
 0x186   :  { %v504_v46 = vsel %vm501_vm14, %v503_v43, %v499_v45  ;;  %v512_v50 = vmul.f32 %v461_v49, %v1847_v15 }
 0x187   :  { %507 = vst [vmem:[#allocation1] sm:$0xff] %v504_v46 }
 0x18e   :  { %v509_v51 = vld [vmem:[#allocation1 + $0x1] ss:$9 sm:$0xff] }
 0x18f   :  { %514 = vst [vmem:[#allocation1] sm:$0xff] %v512_v50  ;;  %v511_v52 = vmul.f32 %v509_v51, %v1932_v6 }
 0x196   :  { %v516_v53 = vld [vmem:[#allocation1 + $0x1] ss:$9 sm:$0xff] }
 0x197   :  { %v1950_v54 = vadd.f32 %v516_v53, %v511_v52 }
 0x199   :  { %1278 = vmatmul.msk.f32.vlgmr.msra.gmra.mxu0 %vm216_vm0, %v1950_v54  ;;  %1280 = vmatmul.msk.f32.vlgmr.msra.gmra.mxu1 %vm216_vm0, %v1950_v54 }
 0x19a   :  { %985 = vmatpush.msra.mxu1 %v1853_v19  ;;  %942 = vmatpush.msra.mxu0 %v1849_v18 }
 0x19c   :  { %986 = vmatpush.msra.mxu1 %v1862_v21  ;;  %943 = vmatpush.msra.mxu0 %v1855_v20 }
 0x19e   :  { %987 = vmatpush.msra.mxu1 %v1869_v23  ;;  %944 = vmatpush.msra.mxu0 %v1864_v22 }
 0x1a0   :  { %988 = vmatpush.msra.mxu1 %v1880_v26  ;;  %945 = vmatpush.msra.mxu0 %v1871_v24 }
 0x216   :  { %v539_v55 = vpop.f32.mrf.mxu0  ;;  %v582_v56 = vpop.f32.mrf.mxu1 }
 0x217   :  { %v543_v57 = vrot.slane %v539_v55, 6  ;;  %v586_v58 = vrot.slane %v582_v56, 6 }
 0x219   :  { %v545_v59 = vadd.f32 %v543_v57, %v1922_v34  ;;  %v588_v60 = vadd.f32 %v586_v58, %v1924_v37 }
 0x21b   :  { %v1279_v61 = vmul.f32 -1.442695, %v545_v59  ;;  %v1281_v62 = vmul.f32 -1.442695, %v588_v60 }
 0x21d   :  { %1337 = vpow2.f32 %v1279_v61 }
 0x21e   :  { %1339 = vpow2.f32 %v1281_v62 }
 0x223   :  { %v1338_v63 = vpop.eup %1337 }
 0x224   :  { %v1340_v0 = vpop.eup %1339  ;;  %v549_v1 = vadd.f32 1.0, %v1338_v63 }
 0x225   :  { %v592_v2 = vadd.f32 1.0, %v1340_v0 }
 0x226   :  { %1341 = vrcp.f32 %v549_v1  ;;  %v561_v17 = vand.u32 2147483648, %v549_v1  ;;  %vm555_vm6 = vweird.f32 %v549_v1  ;;  %v559_v27 = vand.u32 2147483647, %v549_v1 }
 0x227   :  { %1343 = vrcp.f32 %v592_v2  ;;  %v604_v11 = vand.u32 2147483648, %v592_v2  ;;  %v602_v13 = vand.u32 2147483647, %v592_v2  ;;  %vm598_vm4 = vweird.f32 %v592_v2 }
 0x228   :  { %v562_v31 = vor.u32 1.1754944e-38, %v561_v17  ;;  %vm560_vm9 = vcmp.eq.f32.partialorder %v559_v27, 8.507059e+37 }
 0x229   :  { %v605_v25 = vor.u32 1.1754944e-38, %v604_v11  ;;  %vm603_vm7 = vcmp.eq.f32.partialorder %v602_v13, 8.507059e+37 }
 0x22c   :  { %v1342_v3 = vpop.eup %1341 }
 0x22d   :  { %v1344_v4 = vpop.eup %1343  ;;  %v551_v5 = vmul.f32 %v1342_v3, %v549_v1  ;;  %vm556_vm3 = vweird.f32 %v1342_v3 }
 0x22e   :  { %v594_v7 = vmul.f32 %v1344_v4, %v592_v2  ;;  %vm599_vm2 = vweird.f32 %v1344_v4  ;;  %vm557_vm8 = vmor %vm555_vm6, %vm556_vm3 }
 0x22f   :  { %v552_v8 = vsub.f32 1.0, %v551_v5  ;;  %vm600_vm5 = vmor %vm598_vm4, %vm599_vm2 }
 0x230   :  { %v595_v9 = vsub.f32 1.0, %v594_v7 }
 0x231   :  { %v553_v10 = vmul.f32 %v1342_v3, %v552_v8 }
 0x232   :  { %v596_v12 = vmul.f32 %v1344_v4, %v595_v9 }
 0x233   :  { %v554_v14 = vadd.f32 %v1342_v3, %v553_v10 }
 0x234   :  { %v597_v16 = vadd.f32 %v1344_v4, %v596_v12 }
 0x235   :  { %v558_v30 = vsel %vm557_vm8, %v1342_v3, %v554_v14 }
 0x236   :  { %v601_v28 = vsel %vm600_vm5, %v1344_v4, %v597_v16  ;;  %v563_v32 = vsel %vm560_vm9, %v562_v31, %v558_v30 }
 0x237   :  { %v606_v29 = vsel %vm603_vm7, %v605_v25, %v601_v28  ;;  %v614_v33 = vmul.f32 %v563_v32, %v1847_v15 }
 0x238   :  { %609 = vst [vmem:[#allocation1] sm:$0xff] %v606_v29 }
 0x23f   :  { %v611_v35 = vld [vmem:[#allocation1 + $0x2] ss:$9 sm:$0xff] }
 0x240   :  { %616 = vst [vmem:[#allocation1] sm:$0xff] %v614_v33  ;;  %v613_v36 = vmul.f32 %v611_v35, %v1950_v54 }
 0x247   :  { %v618_v38 = vld [vmem:[#allocation1 + $0x2] ss:$9 sm:$0xff] }
 0x248   :  { %v1968_v39 = vadd.f32 %v618_v38, %v613_v36 }
 0x24a   :  { %1282 = vmatmul.msk.f32.vlgmr.msra.gmra.mxu2 %vm216_vm0, %v1968_v39  ;;  %1284 = vmatmul.msk.f32.vlgmr.msra.gmra.mxu3 %vm216_vm0, %v1968_v39 }
 0x24b   :  { %1087 = vmatpush.msra.mxu3 %v1853_v19  ;;  %1044 = vmatpush.msra.mxu2 %v1849_v18 }
 0x24d   :  { %1088 = vmatpush.msra.mxu3 %v1862_v21  ;;  %1045 = vmatpush.msra.mxu2 %v1855_v20 }
 0x24f   :  { %1089 = vmatpush.msra.mxu3 %v1869_v23  ;;  %1046 = vmatpush.msra.mxu2 %v1864_v22 }
 0x251   :  { %1090 = vmatpush.msra.mxu3 %v1880_v26  ;;  %1047 = vmatpush.msra.mxu2 %v1871_v24 }
 0x2cd   :  { %v641_v40 = vpop.f32.mrf.mxu2  ;;  %v684_v41 = vpop.f32.mrf.mxu3 }
 0x2ce   :  { %v645_v42 = vrot.slane %v641_v40, 5  ;;  %v688_v43 = vrot.slane %v684_v41, 5 }
 0x2d0   :  { %v647_v19 = vadd.f32 %v645_v42, %v1922_v34  ;;  %v690_v18 = vadd.f32 %v688_v43, %v1924_v37 }
 0x2d2   :  { %v1283_v44 = vmul.f32 -1.442695, %v647_v19  ;;  %v1285_v21 = vmul.f32 -1.442695, %v690_v18 }
 0x2d4   :  { %1345 = vpow2.f32 %v1283_v44 }
 0x2d5   :  { %1347 = vpow2.f32 %v1285_v21 }
 0x2da   :  { %v1346_v20 = vpop.eup %1345 }
 0x2db   :  { %v1348_v23 = vpop.eup %1347  ;;  %v651_v45 = vadd.f32 1.0, %v1346_v20 }
 0x2dc   :  { %v694_v22 = vadd.f32 1.0, %v1348_v23 }
 0x2dd   :  { %1349 = vrcp.f32 %v651_v45  ;;  %v663_v57 = vand.u32 2147483648, %v651_v45  ;;  %vm657_vm14 = vweird.f32 %v651_v45  ;;  %v661_v59 = vand.u32 2147483647, %v651_v45 }
 0x2de   :  { %1351 = vrcp.f32 %v694_v22  ;;  %v706_v51 = vand.u32 2147483648, %v694_v22  ;;  %v704_v53 = vand.u32 2147483647, %v694_v22  ;;  %vm700_vm12 = vweird.f32 %v694_v22 }
 0x2df   :  { %v664_v63 = vor.u32 1.1754944e-38, %v663_v57  ;;  %vm662_vm2 = vcmp.eq.f32.partialorder %v661_v59, 8.507059e+37 }
 0x2e0   :  { %v707_v58 = vor.u32 1.1754944e-38, %v706_v51  ;;  %vm705_vm15 = vcmp.eq.f32.partialorder %v704_v53, 8.507059e+37 }
 0x2e3   :  { %v1350_v26 = vpop.eup %1349 }
 0x2e4   :  { %v1352_v24 = vpop.eup %1351  ;;  %v653_v46 = vmul.f32 %v1350_v26, %v651_v45  ;;  %vm658_vm11 = vweird.f32 %v1350_v26 }
 0x2e5   :  { %v696_v47 = vmul.f32 %v1352_v24, %v694_v22  ;;  %vm701_vm10 = vweird.f32 %v1352_v24  ;;  %vm659_vm1 = vmor %vm657_vm14, %vm658_vm11 }
 0x2e6   :  { %v654_v48 = vsub.f32 1.0, %v653_v46  ;;  %vm702_vm13 = vmor %vm700_vm12, %vm701_vm10 }
 0x2e7   :  { %v697_v49 = vsub.f32 1.0, %v696_v47 }
 0x2e8   :  { %v655_v50 = vmul.f32 %v1350_v26, %v654_v48 }
 0x2e9   :  { %v698_v52 = vmul.f32 %v1352_v24, %v697_v49 }
 0x2ea   :  { %v656_v55 = vadd.f32 %v1350_v26, %v655_v50 }
 0x2eb   :  { %v699_v56 = vadd.f32 %v1352_v24, %v698_v52 }
 0x2ec   :  { %v660_v62 = vsel %vm659_vm1, %v1350_v26, %v656_v55 }
 0x2ed   :  { %v703_v60 = vsel %vm702_vm13, %v1352_v24, %v699_v56  ;;  %v665_v0 = vsel %vm662_vm2, %v664_v63, %v660_v62 }
 0x2ee   :  { %v708_v61 = vsel %vm705_vm15, %v707_v58, %v703_v60  ;;  %v716_v1 = vmul.f32 %v665_v0, %v1847_v15 }
 0x2ef   :  { %711 = vst [vmem:[#allocation1] sm:$0xff] %v708_v61 }
 0x2f6   :  { %v713_v2 = vld [vmem:[#allocation1 + $0x3] ss:$9 sm:$0xff] }
 0x2f7   :  { %718 = vst [vmem:[#allocation1] sm:$0xff] %v716_v1  ;;  %v715_v3 = vmul.f32 %v713_v2, %v1968_v39 }
 0x2fe   :  { %v720_v4 = vld [vmem:[#allocation1 + $0x3] ss:$9 sm:$0xff] }
 0x2ff   :  { %v1986_v5 = vadd.f32 %v720_v4, %v715_v3 }
 0x301   :  { %1286 = vmatmul.msk.f32.vlgmr.msrb.gmra.mxu0 %vm216_vm0, %v1986_v5  ;;  %1288 = vmatmul.msk.f32.vlgmr.msrb.gmra.mxu1 %vm216_vm0, %v1986_v5 }
 0x37e   :  { %v743_v7 = vpop.f32.mrf.mxu0  ;;  %v786_v8 = vpop.f32.mrf.mxu1 }
 0x37f   :  { %v747_v9 = vrot.slane %v743_v7, 4  ;;  %v790_v10 = vrot.slane %v786_v8, 4 }
 0x381   :  { %v749_v11 = vadd.f32 %v747_v9, %v1922_v34  ;;  %v792_v12 = vadd.f32 %v790_v10, %v1924_v37 }
 0x383   :  { %v1287_v13 = vmul.f32 -1.442695, %v749_v11  ;;  %v1289_v14 = vmul.f32 -1.442695, %v792_v12 }
 0x385   :  { %1353 = vpow2.f32 %v1287_v13 }
 0x386   :  { %1355 = vpow2.f32 %v1289_v14 }
 0x38b   :  { %v1354_v16 = vpop.eup %1353 }
 0x38c   :  { %v1356_v17 = vpop.eup %1355  ;;  %v753_v25 = vadd.f32 1.0, %v1354_v16 }
 0x38d   :  { %v796_v27 = vadd.f32 1.0, %v1356_v17 }
 0x38e   :  { %1357 = vrcp.f32 %v753_v25  ;;  %v765_v43 = vand.u32 2147483648, %v753_v25  ;;  %vm759_vm7 = vweird.f32 %v753_v25  ;;  %v763_v18 = vand.u32 2147483647, %v753_v25 }
 0x38f   :  { %1359 = vrcp.f32 %v796_v27  ;;  %v808_v36 = vand.u32 2147483648, %v796_v27  ;;  %v806_v40 = vand.u32 2147483647, %v796_v27  ;;  %vm802_vm5 = vweird.f32 %v796_v27 }
 0x390   :  { %v766_v23 = vor.u32 1.1754944e-38, %v765_v43  ;;  %vm764_vm10 = vcmp.eq.f32.partialorder %v763_v18, 8.507059e+37 }
 0x391   :  { %v809_v19 = vor.u32 1.1754944e-38, %v808_v36  ;;  %vm807_vm8 = vcmp.eq.f32.partialorder %v806_v40, 8.507059e+37 }
 0x394   :  { %v1358_v28 = vpop.eup %1357 }
 0x395   :  { %v1360_v29 = vpop.eup %1359  ;;  %v755_v30 = vmul.f32 %v1358_v28, %v753_v25  ;;  %vm760_vm4 = vweird.f32 %v1358_v28 }
 0x396   :  { %v798_v31 = vmul.f32 %v1360_v29, %v796_v27  ;;  %vm803_vm3 = vweird.f32 %v1360_v29  ;;  %vm761_vm9 = vmor %vm759_vm7, %vm760_vm4 }
 0x397   :  { %v756_v32 = vsub.f32 1.0, %v755_v30  ;;  %vm804_vm6 = vmor %vm802_vm5, %vm803_vm3 }
 0x398   :  { %v799_v33 = vsub.f32 1.0, %v798_v31 }
 0x399   :  { %v757_v35 = vmul.f32 %v1358_v28, %v756_v32 }
 0x39a   :  { %v800_v38 = vmul.f32 %v1360_v29, %v799_v33 }
 0x39b   :  { %v758_v41 = vadd.f32 %v1358_v28, %v757_v35 }
 0x39c   :  { %v801_v42 = vadd.f32 %v1360_v29, %v800_v38 }
 0x39d   :  { %v762_v20 = vsel %vm761_vm9, %v1358_v28, %v758_v41 }
 0x39e   :  { %v805_v44 = vsel %vm804_vm6, %v1360_v29, %v801_v42  ;;  %v767_v45 = vsel %vm764_vm10, %v766_v23, %v762_v20 }
 0x39f   :  { %v810_v21 = vsel %vm807_vm8, %v809_v19, %v805_v44  ;;  %v818_v22 = vmul.f32 %v767_v45, %v1847_v15 }
 0x3a0   :  { %813 = vst [vmem:[#allocation1] sm:$0xff] %v810_v21 }
 0x3a7   :  { %v815_v26 = vld [vmem:[#allocation1 + $0x4] ss:$9 sm:$0xff] }
 0x3a8   :  { %820 = vst [vmem:[#allocation1] sm:$0xff] %v818_v22  ;;  %v817_v24 = vmul.f32 %v815_v26, %v1986_v5 }
 0x3af   :  { %v822_v46 = vld [vmem:[#allocation1 + $0x4] ss:$9 sm:$0xff] }
 0x3b0   :  { %v1996_v47 = vadd.f32 %v822_v46, %v817_v24 }
 0x3b2   :  { %1290 = vmatmul.msk.f32.vlgmr.msrb.gmra.mxu2 %vm216_vm0, %v1996_v47  ;;  %1292 = vmatmul.msk.f32.vlgmr.msrb.gmra.mxu3 %vm216_vm0, %v1996_v47 }
 0x435   :  { %v845_v48 = vpop.f32.mrf.mxu2  ;;  %v888_v49 = vpop.f32.mrf.mxu3 }
 0x436   :  { %v849_v50 = vrot.slane %v845_v48, 3  ;;  %v892_v51 = vrot.slane %v888_v49, 3 }
 0x438   :  { %v851_v52 = vadd.f32 %v849_v50, %v1922_v34  ;;  %v894_v53 = vadd.f32 %v892_v51, %v1924_v37 }
 0x43a   :  { %v1291_v55 = vmul.f32 -1.442695, %v851_v52  ;;  %v1293_v56 = vmul.f32 -1.442695, %v894_v53 }
 0x43c   :  { %1361 = vpow2.f32 %v1291_v55 }
 0x43d   :  { %1363 = vpow2.f32 %v1293_v56 }
 0x442   :  { %v1362_v57 = vpop.eup %1361 }
 0x443   :  { %v1364_v58 = vpop.eup %1363  ;;  %v855_v59 = vadd.f32 1.0, %v1362_v57 }
 0x444   :  { %v898_v60 = vadd.f32 1.0, %v1364_v58 }
 0x445   :  { %1365 = vrcp.f32 %v855_v59  ;;  %v867_v11 = vand.u32 2147483648, %v855_v59  ;;  %vm861_vm15 = vweird.f32 %v855_v59  ;;  %v865_v13 = vand.u32 2147483647, %v855_v59 }
 0x446   :  { %1367 = vrcp.f32 %v898_v60  ;;  %v910_v4 = vand.u32 2147483648, %v898_v60  ;;  %v908_v8 = vand.u32 2147483647, %v898_v60  ;;  %vm904_vm13 = vweird.f32 %v898_v60 }
 0x447   :  { %v868_v25 = vor.u32 1.1754944e-38, %v867_v11  ;;  %vm866_vm3 = vcmp.eq.f32.partialorder %v865_v13, 8.507059e+37  ;;  %v1167_v11 = vld [vmem:[#allocation17 + $0x10] sm:$0xff] }
 0x448   :  { %v911_v12 = vor.u32 1.1754944e-38, %v910_v4  ;;  %vm909_vm1 = vcmp.eq.f32.partialorder %v908_v8, 8.507059e+37 }
 0x44b   :  { %v1366_v61 = vpop.eup %1365 }
 0x44c   :  { %v1368_v62 = vpop.eup %1367  ;;  %v857_v63 = vmul.f32 %v1366_v61, %v855_v59  ;;  %vm862_vm12 = vweird.f32 %v1366_v61 }
 0x44d   :  { %v900_v0 = vmul.f32 %v1368_v62, %v898_v60  ;;  %vm905_vm11 = vweird.f32 %v1368_v62  ;;  %vm863_vm2 = vmor %vm861_vm15, %vm862_vm12 }
 0x44e   :  { %v858_v1 = vsub.f32 1.0, %v857_v63  ;;  %vm906_vm14 = vmor %vm904_vm13, %vm905_vm11 }
 0x44f   :  { %v901_v2 = vsub.f32 1.0, %v900_v0 }
 0x450   :  { %v859_v3 = vmul.f32 %v1366_v61, %v858_v1 }
 0x451   :  { %v902_v7 = vmul.f32 %v1368_v62, %v901_v2 }
 0x452   :  { %v860_v9 = vadd.f32 %v1366_v61, %v859_v3 }
 0x453   :  { %v903_v10 = vadd.f32 %v1368_v62, %v902_v7 }
 0x454   :  { %v864_v17 = vsel %vm863_vm2, %v1366_v61, %v860_v9  ;;  %v1168_v9 = vld [vmem:[#allocation17 + $0x18] sm:$0xff] }
 0x455   :  { %v907_v14 = vsel %vm906_vm14, %v1368_v62, %v903_v10  ;;  %v869_v27 = vsel %vm866_vm3, %v868_v25, %v864_v17  ;;  %v1164_v10 = vld [vmem:[#allocation16 + $0x18] sm:$0xff]  ;;  %1181 = vmatpush.msrb.mxu0 %v1168_v9  ;;  %v1162_v17 = vld [vmem:[#allocation16 + $0x8] sm:$0xff] }
 0x456   :  { %v912_v16 = vsel %vm909_vm1, %v911_v12, %v907_v14  ;;  %v920_v28 = vmul.f32 %v869_v27, %v1847_v15  ;;  %1204 = vmatpush.msrb.mxu1 %v1164_v10  ;;  %v1163_v14 = vld [vmem:[#allocation16 + $0x10] sm:$0xff] }
 0x457   :  { %915 = vst [vmem:[#allocation1] sm:$0xff] %v912_v16  ;;  %v1166_v16 = vld [vmem:[#allocation17 + $0x8] sm:$0xff]  ;;  %1182 = vmatpush.msrb.mxu0 %v1167_v11 }
 0x458   :  { %1205 = vmatpush.msrb.mxu1 %v1163_v14 }
 0x459   :  { %1183 = vmatpush.msrb.mxu0 %v1166_v16 }
 0x45a   :  { %1206 = vmatpush.msrb.mxu1 %v1162_v17 }
 0x45e   :  { %v917_v29 = vld [vmem:[#allocation1 + $0x5] ss:$9 sm:$0xff] }
 0x45f   :  { %922 = vst [vmem:[#allocation1] sm:$0xff] %v920_v28  ;;  %v919_v30 = vmul.f32 %v917_v29, %v1996_v47  ;;  %v1165_v28 = vld [vmem:[#allocation17] sm:$0xff] }
 0x460   :  { %v1161_v29 = vld [vmem:[#allocation16] sm:$0xff]  ;;  %1184 = vmatpush.msrb.mxu0 %v1165_v28 }
 0x461   :  { %1207 = vmatpush.msrb.mxu1 %v1161_v29 }
 0x466   :  { %v924_v31 = vld [vmem:[#allocation1 + $0x5] ss:$9 sm:$0xff] }
 0x467   :  { %v2006_v32 = vadd.f32 %v924_v31, %v919_v30 }
 0x469   :  { %1294 = vmatmul.msk.f32.vlgmr.msra.gmra.mxu0 %vm216_vm0, %v2006_v32  ;;  %1296 = vmatmul.msk.f32.vlgmr.msra.gmra.mxu1 %vm216_vm0, %v2006_v32 }
 0x471   :  { %1302 = vmatmul.msk.f32.vlgmr.msrb.gmra.mxu0 %vm216_vm0, %v1847_v15 }
 0x4e6   :  { %v947_v33 = vpop.f32.mrf.mxu0  ;;  %v990_v35 = vpop.f32.mrf.mxu1 }
 0x4e7   :  { %v951_v36 = vrot.slane %v947_v33, 2  ;;  %v994_v38 = vrot.slane %v990_v35, 2 }
 0x4e9   :  { %v953_v40 = vadd.f32 %v951_v36, %v1922_v34  ;;  %v996_v41 = vadd.f32 %v994_v38, %v1924_v37 }
 0x4eb   :  { %v1295_v42 = vmul.f32 -1.442695, %v953_v40  ;;  %v1297_v43 = vmul.f32 -1.442695, %v996_v41 }
 0x4ed   :  { %1369 = vpow2.f32 %v1295_v42 }
 0x4ee   :  { %1371 = vpow2.f32 %v1297_v43 }
 0x4f3   :  { %v1370_v19 = vpop.eup %1369 }
 0x4f4   :  { %v1372_v18 = vpop.eup %1371  ;;  %v957_v44 = vadd.f32 1.0, %v1370_v19 }
 0x4f5   :  { %v1000_v21 = vadd.f32 1.0, %v1372_v18 }
 0x4f6   :  { %1373 = vrcp.f32 %v957_v44  ;;  %v969_v53 = vand.u32 2147483648, %v957_v44  ;;  %vm963_vm8 = vweird.f32 %v957_v44  ;;  %v967_v56 = vand.u32 2147483647, %v957_v44 }
 0x4f7   :  { %1375 = vrcp.f32 %v1000_v21  ;;  %v1012_v48 = vand.u32 2147483648, %v1000_v21  ;;  %v1010_v50 = vand.u32 2147483647, %v1000_v21  ;;  %vm1006_vm6 = vweird.f32 %v1000_v21 }
 0x4f8   :  { %v970_v60 = vor.u32 1.1754944e-38, %v969_v53  ;;  %vm968_vm11 = vcmp.eq.f32.partialorder %v967_v56, 8.507059e+37  ;;  %v1135_v53 = vperm.slane %v1986_v5, 0 }
 0x4f9   :  { %v1013_v55 = vor.u32 1.1754944e-38, %v1012_v48  ;;  %vm1011_vm9 = vcmp.eq.f32.partialorder %v1010_v50, 8.507059e+37  ;;  %v1389_v48 = vld [vmem:[#allocation5] sm:$0xff] }
 0x4fc   :  { %v1374_v20 = vpop.eup %1373 }
 0x4fd   :  { %v1376_v23 = vpop.eup %1375  ;;  %v959_v45 = vmul.f32 %v1374_v20, %v957_v44  ;;  %vm964_vm5 = vweird.f32 %v1374_v20 }
 0x4fe   :  { %v1002_v22 = vmul.f32 %v1376_v23, %v1000_v21  ;;  %vm1007_vm4 = vweird.f32 %v1376_v23  ;;  %vm965_vm10 = vmor %vm963_vm8, %vm964_vm5  ;;  %vm1146_vm5 = vcmask 1040384   ;;  %vm1152_vm8 = vcmask 1043456  }
 0x4ff   :  { %v960_v26 = vsub.f32 1.0, %v959_v45  ;;  %vm1008_vm7 = vmor %vm1006_vm6, %vm1007_vm4  ;;  %vm1148_vm6 = vcmask 1041408  }
 0x500   :  { %v1003_v24 = vsub.f32 1.0, %v1002_v22 }
 0x501   :  { %v961_v46 = vmul.f32 %v1374_v20, %v960_v26 }
 0x502   :  { %v1004_v49 = vmul.f32 %v1376_v23, %v1003_v24 }
 0x503   :  { %v962_v51 = vadd.f32 %v1374_v20, %v961_v46 }
 0x504   :  { %v1005_v52 = vadd.f32 %v1376_v23, %v1004_v49 }
 0x505   :  { %v966_v59 = vsel %vm965_vm10, %v1374_v20, %v962_v51  ;;  %v1131_v51 = vperm.slane %v1950_v54, 0  ;;  %vm1156_vm10 = vcmask 1045504  }
 0x506   :  { %v1009_v57 = vsel %vm1008_vm7, %v1376_v23, %v1005_v52  ;;  %v971_v61 = vsel %vm968_vm11, %v970_v60, %v966_v59  ;;  %v1133_v52 = vperm.slane %v1968_v39, 0  ;;  %vm1150_vm7 = vcmask 1042432  }
 0x507   :  { %v1014_v58 = vsel %vm1011_vm9, %v1013_v55, %v1009_v57  ;;  %v1022_v62 = vmul.f32 %v971_v61, %v1847_v15  ;;  %v1137_v55 = vperm.slane %v1996_v47, 0  ;;  %v1139_v57 = vperm.slane %v2006_v32, 0 }
 0x508   :  { %1017 = vst [vmem:[#allocation1] sm:$0xff] %v1014_v58  ;;  %v1147_v58 = vsel %vm1146_vm5, %v1932_v6, %v1131_v51  ;;  %vm1154_vm9 = vcmask 1044480   ;;  %vm1158_vm11 = vcmask 1046528   ;;  %v1186_v6 = vpop.f32.mrf.mxu0 }
 0x509   :  { %v1149_v54 = vsel %vm1148_vm6, %v1147_v58, %v1133_v52 }
 0x50a   :  { %v1151_v61 = vsel %vm1150_vm7, %v1149_v54, %v1135_v53 }
 0x50b   :  { %v1153_v5 = vsel %vm1152_vm8, %v1151_v61, %v1137_v55 }
 0x50c   :  { %v1155_v47 = vsel %vm1154_vm9, %v1153_v5, %v1139_v57 }
 0x50f   :  { %v1019_v63 = vld [vmem:[#allocation1 + $0x6] ss:$9 sm:$0xff] }
 0x510   :  { %1024 = vst [vmem:[#allocation1] sm:$0xff] %v1022_v62  ;;  %v1021_v0 = vmul.f32 %v1019_v63, %v2006_v32  ;;  %v1320_v32 = vld [vmem:[%s2059_s14] ss:$0 sm:$0xff]  ;;  %s1707_s14 = smov [#allocation19]  }
 0x511   :  { %s1233_s25 = sshll.u32 %s1707_s14, 4  ;;  %s1234_s25 = int_to_ptr.vmem [resolvable:$true] %s1233_s25 }
 0x517   :  { %v1026_v1 = vld [vmem:[#allocation1 + $0x6] ss:$9 sm:$0xff] }
 0x518   :  { %v2016_v2 = vadd.f32 %v1026_v1, %v1021_v0 }
 0x51a   :  { %1298 = vmatmul.msk.f32.vlgmr.msra.gmra.mxu2 %vm216_vm0, %v2016_v2  ;;  %1300 = vmatmul.msk.f32.vlgmr.msra.gmra.mxu3 %vm216_vm0, %v2016_v2  ;;  %v1141_v60 = vperm.slane %v2016_v2, 0 }
 0x51c   :  { %v1157_v63 = vsel %vm1156_vm10, %v1155_v47, %v1141_v60 }
 0x59d   :  { %v1049_v3 = vpop.f32.mrf.mxu2  ;;  %v1092_v4 = vpop.f32.mrf.mxu3 }
 0x59e   :  { %v1053_v7 = vrot.slane %v1049_v3, 1  ;;  %v1096_v8 = vrot.slane %v1092_v4, 1 }
 0x5a0   :  { %v1055_v12 = vadd.f32 %v1053_v7, %v1922_v34  ;;  %v1098_v13 = vadd.f32 %v1096_v8, %v1924_v37 }
 0x5a2   :  { %v1299_v25 = vmul.f32 -1.442695, %v1055_v12  ;;  %v1301_v27 = vmul.f32 -1.442695, %v1098_v13 }
 0x5a4   :  { %1377 = vpow2.f32 %v1299_v25 }
 0x5a5   :  { %1379 = vpow2.f32 %v1301_v27 }
 0x5aa   :  { %v1378_v34 = vpop.eup %1377 }
 0x5ab   :  { %v1380_v37 = vpop.eup %1379  ;;  %v1059_v30 = vadd.f32 1.0, %v1378_v34 }
 0x5ac   :  { %v1102_v31 = vadd.f32 1.0, %v1380_v37 }
 0x5ad   :  { %1381 = vrcp.f32 %v1059_v30  ;;  %v1071_v21 = vand.u32 2147483648, %v1059_v30  ;;  %vm1065_vm1 = vweird.f32 %v1059_v30  ;;  %v1069_v23 = vand.u32 2147483647, %v1059_v30 }
 0x5ae   :  { %1383 = vrcp.f32 %v1102_v31  ;;  %v1114_v43 = vand.u32 2147483648, %v1102_v31  ;;  %v1112_v18 = vand.u32 2147483647, %v1102_v31  ;;  %vm1108_vm14 = vweird.f32 %v1102_v31 }
 0x5af   :  { %v1072_v24 = vor.u32 1.1754944e-38, %v1071_v21  ;;  %vm1070_vm4 = vcmp.eq.f32.partialorder %v1069_v23, 8.507059e+37 }
 0x5b0   :  { %v1115_v20 = vor.u32 1.1754944e-38, %v1114_v43  ;;  %vm1113_vm2 = vcmp.eq.f32.partialorder %v1112_v18, 8.507059e+37 }
 0x5b3   :  { %v1382_v33 = vpop.eup %1381 }
 0x5b4   :  { %v1384_v35 = vpop.eup %1383  ;;  %v1061_v36 = vmul.f32 %v1382_v33, %v1059_v30  ;;  %vm1066_vm13 = vweird.f32 %v1382_v33 }
 0x5b5   :  { %v1104_v38 = vmul.f32 %v1384_v35, %v1102_v31  ;;  %vm1109_vm12 = vweird.f32 %v1384_v35  ;;  %vm1067_vm3 = vmor %vm1065_vm1, %vm1066_vm13 }
 0x5b6   :  { %v1062_v40 = vsub.f32 1.0, %v1061_v36  ;;  %vm1110_vm15 = vmor %vm1108_vm14, %vm1109_vm12 }
 0x5b7   :  { %v1105_v41 = vsub.f32 1.0, %v1104_v38 }
 0x5b8   :  { %v1063_v42 = vmul.f32 %v1382_v33, %v1062_v40 }
 0x5b9   :  { %v1106_v19 = vmul.f32 %v1384_v35, %v1105_v41 }
 0x5ba   :  { %v1064_v44 = vadd.f32 %v1382_v33, %v1063_v42 }
 0x5bb   :  { %v1107_v15 = vadd.f32 %v1384_v35, %v1106_v19 }
 0x5bc   :  { %v1068_v26 = vsel %vm1067_vm3, %v1382_v33, %v1064_v44 }
 0x5bd   :  { %v1111_v45 = vsel %vm1110_vm15, %v1384_v35, %v1107_v15  ;;  %v1073_v46 = vsel %vm1070_vm4, %v1072_v24, %v1068_v26 }
 0x5be   :  { %v1116_v22 = vsel %vm1113_vm2, %v1115_v20, %v1111_v45  ;;  %v1124_v49 = vmul.f32 %v1389_v48, %v1073_v46 }
 0x5bf   :  { %1119 = vst [vmem:[#allocation1] sm:$0xff] %v1116_v22 }
 0x5c6   :  { %v1121_v50 = vld [vmem:[#allocation1 + $0x7] ss:$9 sm:$0xff] }
 0x5c7   :  { %1126 = vst [vmem:[#allocation1] sm:$0xff] %v1124_v49  ;;  %v1123_v56 = vmul.f32 %v1121_v50, %v2016_v2 }
 0x5ce   :  { %v1128_v59 = vld [vmem:[#allocation1 + $0x7] ss:$9 sm:$0xff] }
 0x5cf   :  { %v1130_v39 = vadd.f32 %v1128_v59, %v1123_v56 }
 0x5d1   :  { %v1144_v62 = vperm.slane %v1130_v39, 0 }
 0x5d3   :  { %v1159_v0 = vsel %vm1158_vm11, %v1157_v63, %v1144_v62 }
 0x5d4   :  { %1303 = vmatmul.msk.f32.vlgmr.msrb.gmra.mxu1 %vm216_vm0, %v1159_v0  ;;  %1160 = vst.msk [vmem:[#allocation20] sm:$0xff] %vm216_vm0, %v1159_v0 }
 0x5d5   :  { %1249 = dma.vmem_to_hbm [thread:$0]  %s1245_s22, 128, %s1247_s24, [#allocation21]  }
 0x651   :  { %v1209_v1 = vpop.f32.mrf.mxu1 }
 0x652   :  { %v1210_v2 = vadd.f32 %v1209_v1, %v1186_v6 }
 0x654   :  { %v1216_v3 = vadd.f32 %v1320_v32, %v1210_v2 }
 0x656   :  { %1217 = vmax.xlane.f32.xlu0 %v1216_v3 }
 0x6c9   :  { %v1218_v4 = vpop.xlane.xlu0 %1217 }
 0x6ca   :  { %v1219_v7 = vsub.f32 %v1216_v3, %v1218_v4 }
 0x6cc   :  { %v1220_v8 = vmul.f32 1.442695, %v1219_v7 }
 0x6ce   :  { %1385 = vpow2.f32 %v1220_v8 }
 0x6d4   :  { %v1386_v9 = vpop.eup %1385 }
 0x6d5   :  { %1222 = vadd.xlane.f32.xlu0 %v1386_v9 }
 0x748   :  { %v1223_v10 = vpop.xlane.xlu0 %1222 }
 0x749   :  { %1387 = vlog2.f32 %v1223_v10 }
 0x74f   :  { %v1388_v11 = vpop.eup %1387 }
 0x750   :  { %v1225_v12 = vmul.f32 0.6931472, %v1388_v11 }
 0x752   :  { %v1226_v13 = vsub.f32 %v1219_v7, %v1225_v12 }
 0x754   :  { %1227 = vst [vmem:[#allocation19] sm:$0xff] %v1226_v13 }
 0x755   :  { %1238 = dma.vmem_to_hbm [thread:$0]  %s1234_s25, 128, %s1236_s27, [#allocation4]  }
 0x756   :  { %1690 = dma.done.wait [#allocation4], 128  }
 0x757   :  { %1691 = vsyncadd [#allocation4], 4294967168 }
 0x758   :  { %1692 = dma.done.wait [#allocation21], 128  }
 0x759   :  { %1693 = vsyncadd [#allocation21], 4294967168 }
 0x75a   :  { %1258 = vsyncpa [#allocation3], 1 }
 0x75b   :  { %1259 = vsyncpa [#allocation6], 1 }
 0x75c   :  { %1260 = vsyncpa [#allocation9], 1 }
 0x75d   :  { %1261 = vsyncpa [#allocation12], 1 }
 0x75e   :  { %1262 = vsyncpa [#allocation15], 1 }
 0x75f   :  { %1263 = vsyncpa [#allocation18], 1 }
 0x760   :  { %1264 = vsyncpa [#allocation4], 1 }
 0x761   :  { %1265 = vsyncpa [#allocation21], 1 }

</bundles_post_ra>
